<compile_context>
chip_gen: v7x
topology: tpu7x:2x2x1
jax: 0.10.0
libtpu: 0.0.40
codegen_flags: <defaults>
</compile_context>

<pallas_src>
import jax
import jax.numpy as jnp
from jax.experimental import pallas as pl
from jax.experimental.pallas import tpu as pltpu

M_CONST = 100000.0  # Pruner's self.m
INIT_W = 0.005      # deterministic init for the scalar weight

_SMALL_INPUT_BYTES = 256 << 10  # below this, fused XLA multiply beats pallas_call overhead


def _cdiv(a, b):
    return -(-a // b)


def _round_up(a, b):
    return _cdiv(a, b) * b


def _vmem_capacity_bytes():
    try:
        return int(getattr(pltpu.get_tpu_info(), "vmem_capacity_bytes", 64 << 20))
    except Exception:
        return 64 << 20


_VMEM_CAP = _vmem_capacity_bytes()
if _VMEM_CAP >= (100 << 20):
    # v5e / v6e: 128 MiB VMEM -> bigger tiles amortize per-step overhead.
    _TARGET_TILE_BYTES = 8 << 20
    _VMEM_LIMIT_CAP = 48 << 20
else:
    # v7x (64 MiB per TensorCore) or unknown: smaller tiles, tighter budget.
    _TARGET_TILE_BYTES = 4 << 20
    _VMEM_LIMIT_CAP = 28 << 20


def _pruner_kernel(sg_ref, x_ref, o_ref):
    # sg_ref: SMEM (1,) f32 precomputed scalar gate sg = saw(w) + gate(w)
    # x_ref / o_ref: VMEM (row_tile, cols) tiles; multiply in native dtype.
    o_ref[...] = x_ref[...] * sg_ref[0].astype(o_ref.dtype)


def _compute_sg(weight):
    # Scalar-only math (gate is NaN at w == 0, matching the PyTorch definition).
    w = weight[0].astype(jnp.float32)
    gate = 0.5 * w / jnp.abs(w) + 0.5
    saw = (M_CONST * w - jnp.floor(M_CONST * w)) / M_CONST
    return (saw + gate).reshape(1)


def pruner_forward(x, weight):
    """x: arbitrary-shape float array (e.g. NCHW); weight: (1,) float32 parameter."""
    orig_shape = x.shape
    dtype = x.dtype
    n = x.size
    itemsize = jnp.dtype(dtype).itemsize

    sg = _compute_sg(weight)

    # Fast path 1: tiny inputs (the module's typical NCHW activations).
    if n * itemsize <= _SMALL_INPUT_BYTES:
        return (sg[0].astype(dtype) * x).astype(dtype)

    # Widest lane-dense column count that divides n exactly (no pad copy).
    cols = 0
    for c in (1024, 512, 256, 128):
        if n % c == 0:
            cols = c
            break

    # Fast path 2: n not a multiple of 128.  Any re-alignment (pad+slice or
    # bulk+tail+concat) costs an extra full HBM read+write of the tensor, so
    # the fused XLA scalar-multiply (minimal 2n bytes of traffic) wins here.
    if cols == 0:
        return (sg[0].astype(dtype) * x).astype(dtype)

    rows = n // cols
    pack = max(8, 32 // itemsize)  # sublane packing: 8 f32 / 16 bf16 / 32 int8

    if rows < 2 * pack:
        # Too few rows to split into two legal blocks: single full-extent block.
        row_tile = rows
    else:
        # Target ~_TARGET_TILE_BYTES per buffer, but always expose >= 2 grid
        # blocks so v7x can shard the "parallel" grid across both TensorCores.
        target_rows = max(pack, (_TARGET_TILE_BYTES // (cols * itemsize)) // pack * pack)
        row_tile = min(target_rows, _round_up(_cdiv(rows, 2), pack))
    grid = _cdiv(rows, row_tile)  # final block may be ragged; Pallas masks its writes

    x2 = x.reshape(rows, cols)

    # Explicit VMEM budget: double-buffered in + out tiles plus margin,
    # capped generation-aware (v7x has only 64 MiB per TensorCore).
    tile_bytes = row_tile * cols * itemsize
    vmem_limit = int(min(_VMEM_LIMIT_CAP, max(8 << 20, 5 * tile_bytes)))

    out2 = pl.pallas_call(
        _pruner_kernel,
        out_shape=jax.ShapeDtypeStruct((rows, cols), dtype),
        grid_spec=pltpu.PrefetchScalarGridSpec(
            num_scalar_prefetch=0,
            grid=(grid,),
            in_specs=[
                pl.BlockSpec(memory_space=pltpu.MemorySpace.SMEM),  # sg scalar
                pl.BlockSpec((row_tile, cols), lambda i: (i, 0)),   # x tile
            ],
            out_specs=pl.BlockSpec((row_tile, cols), lambda i: (i, 0)),
        ),
        compiler_params=pltpu.CompilerParams(
            dimension_semantics=("parallel",),
            vmem_limit_bytes=vmem_limit,
        ),
        cost_estimate=pl.CostEstimate(
            flops=rows * cols,
            transcendentals=0,
            bytes_accessed=2 * rows * cols * itemsize,
        ),
    )(sg, x2)

    return out2.reshape(orig_shape)


def pruner_forward_ref(x, weight):
    """Pure-JAX reference matching the PyTorch module exactly."""
    w = weight[0].astype(jnp.float32)
    gate = 0.5 * w / jnp.abs(w) + 0.5
    saw = (M_CONST * w - jnp.floor(M_CONST * w)) / M_CONST
    sg = saw + gate
    return (sg.astype(x.dtype) * x).astype(x.dtype)


if __name__ == "__main__":
    key = jax.random.PRNGKey(0)
    weight = jnp.array([INIT_W], dtype=jnp.float32)  # nn.Parameter([init])

    # Primary small NCHW example (typical module usage) -> small-input fast path.
    x = jax.random.normal(key, (2, 4, 16, 16), dtype=jnp.float32)
    out = jax.block_until_ready(pruner_forward(x, weight))
    ref = pruner_forward_ref(x, weight)
    assert out.shape == x.shape and out.dtype == x.dtype
    assert jnp.allclose(out, ref, atol=1e-6, rtol=1e-6)

    # Exercise the Pallas paths: multi-block f32, packed bf16, ragged last
    # block, and the odd-size XLA fallback (no pad copy anywhere).
    checks = [
        ((16, 16, 64, 64), jnp.float32),  # 4 MiB -> >= 2 lane-dense blocks
        ((8, 4, 64, 128), jnp.bfloat16),  # 512 KiB bf16 -> packed sublanes
        ((5, 13, 64, 64), jnp.float32),   # rows=260 -> ragged (masked) final block
        ((3, 5, 33, 17), jnp.float32),    # n % 128 != 0 -> fused XLA fallback
    ]
    for shape, dt in checks:
        xb = jax.random.normal(jax.random.PRNGKey(1), shape, dtype=dt)
        ob = jax.block_until_ready(pruner_forward(xb, weight))
        rb = pruner_forward_ref(xb, weight)
        assert ob.shape == xb.shape and ob.dtype == xb.dtype
        assert jnp.allclose(ob.astype(jnp.float32), rb.astype(jnp.float32),
                            atol=1e-5, rtol=1e-5)

    print("KERNEL_OK")
</pallas_src>

<mosaic_0001>
module attributes {stable_mosaic.version = 11 : i64} {
  func.func @_pruner_kernel(%arg0: i32, %arg1: memref<1xf32, #tpu.memory_space<smem>>, %arg2: memref<512x1024xf32, #tpu.memory_space<vmem>>, %arg3: memref<512x1024xf32, #tpu.memory_space<vmem>>) attributes {dimension_semantics = [#tpu.dimension_semantics<parallel>], iteration_bounds = array<i64: 2>, scalar_prefetch = 0 : i64, scratch_operands = 0 : i64, tpu.core_type = #tpu.core_type<tc>, window_params = [{transform_indices = @transform_0, window_bounds = array<i64: 1>}, {transform_indices = @transform_1, window_bounds = array<i64: 512, 1024>}, {transform_indices = @transform_2, window_bounds = array<i64: 512, 1024>}]} {
    %c0 = arith.constant 0 : index
    %c0_0 = arith.constant 0 : index
    %0 = vector.load %arg2[%c0, %c0_0] : memref<512x1024xf32, #tpu.memory_space<vmem>>, vector<512x1024xf32>
    %c0_1 = arith.constant 0 : index
    %1 = memref.load %arg1[%c0_1] : memref<1xf32, #tpu.memory_space<smem>>
    %2 = vector.broadcast %1 : f32 to vector<512x1024xf32>
    %3 = arith.mulf %0, %2 : vector<512x1024xf32>
    %c0_2 = arith.constant 0 : index
    %c0_3 = arith.constant 0 : index
    %4 = vector.load %arg3[%c0_2, %c0_3] : memref<512x1024xf32, #tpu.memory_space<vmem>>, vector<512x1024xf32>
    tpu.vector_store %arg3[%c0_2, %c0_3], %3 {strides = array<i32>} : memref<512x1024xf32, #tpu.memory_space<vmem>>, vector<512x1024xf32>,
    return
  }
  func.func @transform_0(%arg0: i32) -> i32 {
    %c0_i32 = arith.constant 0 : i32
    %c0_i32_0 = arith.constant 0 : i32
    return %c0_i32 : i32
  }
  func.func @transform_1(%arg0: i32) -> (i32, i32) {
    %c0_i32 = arith.constant 0 : i32
    %c0_i32_0 = arith.constant 0 : i32
    return %arg0, %c0_i32 : i32, i32
  }
  func.func @transform_2(%arg0: i32) -> (i32, i32) {
    %c0_i32 = arith.constant 0 : i32
    %c0_i32_0 = arith.constant 0 : i32
    return %arg0, %c0_i32 : i32, i32
  }
}

</mosaic_0001>

<bundles_post_ra>
// kernel: tpu_custom_call.1
= control target key start
LH: loop header
LB: loop body
LE: loop exit
PB: predicated region body
PF: predicated region fallthrough
CT: control target
= control target key end

     0   :  { %s3689_s0 = inlined_call_operand.<no memory space> [shape: f32[1], index: 0, kind: input, shape index: {}]   ;;  %s3690_s1 = inlined_call_operand.hbm [shape: f32[1024,1024], index: 1, kind: input, shape index: {}]   ;;  %s3691_s2 = inlined_call_operand.hbm [shape: f32[1024,1024], index: 2, kind: output, shape index: {}]  }
   0x1   :  { %7 = sst [smem:[#allocation2]] %s3689_s0 }
   0x2   :  { %8 = vsyncpa [#allocation4], 0 }
   0x3   :  { %10 = vsyncpa [#allocation4 + $0x1], 0 }
   0x4   :  { %11 = vsyncpa [#allocation5], 0 }
   0x5   :  { %13 = vsyncpa [#allocation5 + $0x1], 0  ;;  %s1984_s11 = smov 0   ;;  %s1986_s12 = smov 0  }
   0x6   :  { %s1988_s13 = smov 0   ;;  %s1990_s14 = smov 0  }
   0x7 LB: > { %s2005_s0 = sadd.s32 4294967295, %s1958_s14   ;;  %s1792_s15 = sadd.s32 4294967294, %s1958_s14   ;;  %s1958_s14 = sphi %s1990_s14, %s3704_s14   ;;  %s1954_s13 = sphi %s1988_s13, %s3703_s13   ;;  %s1950_s12 = sphi %s1986_s12, %s3702_s12   ;;  %s1946_s11 = sphi %s1984_s11, %s3701_s11  }
   0x8   : > { %s2009_s16 = sadd.s32 1, %s1958_s14   ;;  %s47_s17 = sadd.s32 1, %s1954_s13 }
   0x9   : > { %s44_s18 = ssub.s32 %s1958_s14, %s2009_s16  ;;  %p54_p0 = scmp.ne.s32.totalorder %s1954_s13, %s1950_s12 }
   0xa   : > { %p45_p1 = scmp.eq.s32.totalorder %s44_s18, 0  ;;  %p55_p2 = scmp.eq.s32.totalorder %s1958_s14, 0 }
   0xb   : > { %p60_p3 = scmp.ne.s32.totalorder %s1950_s12, %s1946_s11  ;;  %p61_p4 = scmp.eq.s32.totalorder %s2005_s0, 0 }
   0xc   : > { %s2021_s19 = scalar_select %p45_p1, %s1954_s13, %s47_s17  }
   0xd   : > { %p2023_p5 = por %p55_p2, %p54_p0  ;;  %p2027_p6 = por %p61_p4, %p60_p3 }
   0xe   : > { %p84_p7 = scmp.eq.s32.totalorder %s2005_s0, 1  ;;  %p90_p8 = scmp.eq.s32.totalorder %s1792_s15, 1 }
   0xf   : > { %p1824_p10 = scmp.lt.s32.totalorder %s1958_s14, 2  ;;  %s113_s24 = sand.u32 1, %s1954_s13  }
  0x10   : > { %p2034_p11 = por %p84_p7, %p54_p0  ;;  %p2038_p12 = por %p90_p8, %p60_p3 }
  0x11   : > { %s1809_s25 = sshll.u32 %s1958_s14, 16  ;;  %s1795_s26 = sshll.u32 %s113_s24, 12 }
  0x12   : > { %s3695_s22 = scalar_select %p2034_p11, 1, 0 }
  0x13   : > { %s3696_s23 = scalar_select %p2038_p12, 1, 0 }
  0x14   : > { %s2047_s29 = scalar_lea.hbm %s3690_s1, %s1809_s25  ;;  %s117_s30 = scalar_lea.vmem [#allocation3], %s1795_s26 }
  0x15   : > { %s125_s3 = sshll.u32 %s117_s30, 4  ;;  %p2051_p13 = pnand %p1824_p10, %p2023_p5  ;;  %s2055_s3 = int_to_ptr.vmem [resolvable:$true] %s125_s3 }
  0x16   : > { %s2057_s5 = scalar_lea.sflag [#allocation4], %s113_s24  ;;  %s1862_s6 = scalar_lea.hbm %s2047_s29, 65536 }
  0x17   : > { %p1863_p0 = scmp.ne.s32.totalorder %s2047_s29, %s1862_s6  ;;  %p1864_p1 = pneg %p2051_p13 }
  0x18   : > { %s1867_s9 = scalar_lea.hbm %s3690_s1, 131072  ;;  %p1868_p4 = scmp.lt.u32.totalorder %s2047_s29, %s3690_s1 }
  0x19   : > { %p1865_p2 = pnand %p1864_p1, %p1863_p0  ;;  %p1869_p5 = scmp.lt.u32.totalorder %s1867_s9, %s1862_s6 }
  0x1a   : > { %p1871_p8 = scmp.lt.u32.totalorder %s1862_s6, %s2047_s29 }
  0x1b   : > { %p1866_p3 = pneg %p1865_p2  ;;  %p1870_p7 = por %p1869_p5, %p1868_p4 }
  0x1d   : > { %p1872_p10 = por %p1871_p8, %p1870_p7 }
  0x1f   : > { %p1873_p9 = pnand %p1872_p10, %p1866_p3 }
  0x21   : > { %1876 = shalt.err (!%p1873_p9)
}
  0x22   : > { %s1877_s17 = scalar_lea.vmem %s2055_s3, 65536  ;;  %s1960_s18 = smov [#allocation3]  }
  0x23   : > { %p1878_p0 = scmp.ne.s32.totalorder %s2055_s3, %s1877_s17  ;;  %s1882_s20 = sshll.u32 %s1960_s18, 4  ;;  %s1883_s20 = int_to_ptr.vmem [resolvable:$false] %s1882_s20 }
  0x24   : > { %s1884_s24 = scalar_lea.vmem %s1883_s20, 131072  ;;  %p1885_p11 = scmp.lt.s32.totalorder %s2055_s3, %s1883_s20 }
  0x25   : > { %p1880_p2 = pnand %p1878_p0, %p1864_p1  ;;  %p1886_p4 = scmp.lt.s32.totalorder %s1884_s24, %s1877_s17 }
  0x27   : > { %p1881_p12 = pneg %p1880_p2  ;;  %p1887_p5 = por %p1886_p4, %p1885_p11 }
  0x29   : > { %p1888_p7 = pnand %p1887_p5, %p1881_p12 }
  0x2b   : > { %1891 = shalt.err (!%p1888_p7)
}
  0x2c   : > { %s1961_s25 = smov 1024   ;;  %s1962_s26 = smov 64  }
  0x2d   : > { %1819 = dma.hbm_to_vmem [thread:$0]  (!%p2051_p13), %s2047_s29, 65536, %s2055_s3, %s2057_s5, %s1961_s25, %s1961_s25, %s1962_s26  }
  0x2e   : > { %p1799_p9 = scmp.ge.s32.totalorder %s1958_s14, 1  ;;  %p133_p1 = scmp.lt.s32.totalorder %s1958_s14, 3 }
  0x30   : > { %p134_p3 = pnand %p1799_p9, %p133_p1 }
  0x31   : > { %s2088_s27 = sand.u32 (!%p134_p3), 1, %s1950_s12  }
  0x32   : > { %137 = sbr.rel (%p134_p3) target bundleno = 337 (0x151), region = 28  ;;  %s1800_s28 = sshll.u32 (!%p134_p3), %s2088_s27, 12 }
  0x33   : > { %s140_s30 = scalar_lea.sflag (!%p134_p3), [#allocation4], %s2088_s27  ;;  %s2092_s6 = scalar_lea.vmem (!%p134_p3), [#allocation3], %s1800_s28 }
  0x39   : > { %1937 = dma.done.wait (%p2027_p6), %s140_s30, 65536  }
  0x3a   : > { %1939 = vsyncadd (%p2027_p6), %s140_s30, 4294901760  ;;  %s678_s29 = sld [smem:[#allocation2]]  ;;  %v166_v0 = vld [vmem:[%s2092_s6] sm:$0xff]  ;;  %v167_v2 = vld [vmem:[%s2092_s6 + $0x8] sm:$0xff]  ;;  %s2115_s21 = scalar_lea.vmem [#allocation6], %s1800_s28 }
  0x3b   : > { %v168_v3 = vld [vmem:[%s2092_s6 + $0x10] sm:$0xff]  ;;  %v169_v7 = vld [vmem:[%s2092_s6 + $0x18] sm:$0xff]  ;;  %v170_v8 = vld [vmem:[%s2092_s6 + $0x20] sm:$0xff]  ;;  %s1811_s3 = sshll.u32 %s2005_s0, 16  ;;  %s1719_s4 = sshll.u32 %s2115_s21, 4  ;;  %s3635_s4 = int_to_ptr.vmem [resolvable:$true] %s1719_s4 }
  0x3c   : > { %v171_v9 = vld [vmem:[%s2092_s6 + $0x28] sm:$0xff]  ;;  %v172_v13 = vld [vmem:[%s2092_s6 + $0x30] sm:$0xff]  ;;  %v173_v14 = vld [vmem:[%s2092_s6 + $0x38] sm:$0xff]  ;;  %s3633_s7 = scalar_lea.hbm %s3691_s2, %s1811_s3  ;;  %s1705_s8 = scalar_lea.sflag [#allocation5], %s2088_s27 }
  0x3d   : > { %v174_v15 = vld [vmem:[%s2092_s6 + $0x40] sm:$0xff]  ;;  %v175_v19 = vld [vmem:[%s2092_s6 + $0x48] sm:$0xff]  ;;  %v176_v20 = vld [vmem:[%s2092_s6 + $0x50] sm:$0xff]  ;;  %s1892_s9 = scalar_lea.vmem %s3635_s4, 65536  ;;  %p3698_p11 = scmp.ne.s32.totalorder %s3695_s22, 0 }
  0x3e   : > { %v177_v21 = vld [vmem:[%s2092_s6 + $0x58] sm:$0xff]  ;;  %v178_v25 = vld [vmem:[%s2092_s6 + $0x60] sm:$0xff]  ;;  %v179_v26 = vld [vmem:[%s2092_s6 + $0x68] sm:$0xff]  ;;  %p1893_p6 = scmp.ne.s32.totalorder %s3635_s4, %s1892_s9  ;;  %s1963_s10 = smov [#allocation6]  }
  0x3f   : > { %v180_v27 = vld [vmem:[%s2092_s6 + $0x70] sm:$0xff]  ;;  %v181_v31 = vld [vmem:[%s2092_s6 + $0x78] sm:$0xff]  ;;  %v182_v32 = vld [vmem:[%s2092_s6 + $0x80] sm:$0xff]  ;;  %s1896_s15 = sshll.u32 %s1963_s10, 4  ;;  %s1897_s15 = int_to_ptr.vmem [resolvable:$false] %s1896_s15 }
  0x40   : > { %v2099_v1 = vstv %s678_s29  ;;  %v183_v33 = vld [vmem:[%s2092_s6 + $0x88] sm:$0xff]  ;;  %v184_v37 = vld [vmem:[%s2092_s6 + $0x90] sm:$0xff]  ;;  %v185_v38 = vld [vmem:[%s2092_s6 + $0x98] sm:$0xff]  ;;  %p1894_p12 = pnand %p1893_p6, %p3698_p11  ;;  %s1898_s17 = scalar_lea.vmem %s1897_s15, 131072 }
  0x41   : > { %v680_v4 = vmul.f32 %v2099_v1, %v166_v0  ;;  %v681_v5 = vmul.f32 %v2099_v1, %v167_v2  ;;  %v682_v6 = vmul.f32 %v2099_v1, %v168_v3  ;;  %v683_v10 = vmul.f32 %v2099_v1, %v169_v7  ;;  %v186_v39 = vld [vmem:[%s2092_s6 + $0xa0] sm:$0xff]  ;;  %v187_v43 = vld [vmem:[%s2092_s6 + $0xa8] sm:$0xff]  ;;  %v188_v44 = vld [vmem:[%s2092_s6 + $0xb0] sm:$0xff]  ;;  %p1899_p8 = scmp.lt.s32.totalorder %s3635_s4, %s1897_s15  ;;  %p1900_p10 = scmp.lt.s32.totalorder %s1898_s17, %s1892_s9 }
  0x42   : > { %v684_v11 = vmul.f32 %v2099_v1, %v170_v8  ;;  %v685_v12 = vmul.f32 %v2099_v1, %v171_v9  ;;  %v686_v16 = vmul.f32 %v2099_v1, %v172_v13  ;;  %v687_v17 = vmul.f32 %v2099_v1, %v173_v14  ;;  %v189_v45 = vld [vmem:[%s2092_s6 + $0xb8] sm:$0xff]  ;;  %v190_v49 = vld [vmem:[%s2092_s6 + $0xc0] sm:$0xff]  ;;  %v191_v50 = vld [vmem:[%s2092_s6 + $0xc8] sm:$0xff]  ;;  %p1895_p13 = pneg %p1894_p12 }
  0x43   : > { %1192 = vst [vmem:[%s2115_s21] sm:$0xff] %v680_v4  ;;  %1193 = vst [vmem:[%s2115_s21 + $0x8] sm:$0xff] %v681_v5  ;;  %v688_v18 = vmul.f32 %v2099_v1, %v174_v15  ;;  %v689_v22 = vmul.f32 %v2099_v1, %v175_v19  ;;  %v690_v23 = vmul.f32 %v2099_v1, %v176_v20  ;;  %v192_v51 = vld [vmem:[%s2092_s6 + $0xd0] sm:$0xff]  ;;  %v193_v55 = vld [vmem:[%s2092_s6 + $0xd8] sm:$0xff]  ;;  %p1901_p0 = por %p1900_p10, %p1899_p8 }
  0x44   : > { %1194 = vst [vmem:[%s2115_s21 + $0x10] sm:$0xff] %v682_v6  ;;  %1195 = vst [vmem:[%s2115_s21 + $0x18] sm:$0xff] %v683_v10  ;;  %v691_v24 = vmul.f32 %v2099_v1, %v177_v21  ;;  %v692_v28 = vmul.f32 %v2099_v1, %v178_v25  ;;  %v693_v29 = vmul.f32 %v2099_v1, %v179_v26  ;;  %v194_v56 = vld [vmem:[%s2092_s6 + $0xe0] sm:$0xff]  ;;  %v195_v57 = vld [vmem:[%s2092_s6 + $0xe8] sm:$0xff] }
  0x45   : > { %1196 = vst [vmem:[%s2115_s21 + $0x20] sm:$0xff] %v684_v11  ;;  %1197 = vst [vmem:[%s2115_s21 + $0x28] sm:$0xff] %v685_v12  ;;  %v694_v30 = vmul.f32 %v2099_v1, %v180_v27  ;;  %v695_v34 = vmul.f32 %v2099_v1, %v181_v31  ;;  %v696_v35 = vmul.f32 %v2099_v1, %v182_v32  ;;  %v196_v61 = vld [vmem:[%s2092_s6 + $0xf0] sm:$0xff]  ;;  %v197_v62 = vld [vmem:[%s2092_s6 + $0xf8] sm:$0xff]  ;;  %p1902_p2 = pnand %p1901_p0, %p1895_p13 }
  0x46   : > { %1198 = vst [vmem:[%s2115_s21 + $0x30] sm:$0xff] %v686_v16  ;;  %1199 = vst [vmem:[%s2115_s21 + $0x38] sm:$0xff] %v687_v17  ;;  %v697_v36 = vmul.f32 %v2099_v1, %v183_v33  ;;  %v698_v40 = vmul.f32 %v2099_v1, %v184_v37  ;;  %v699_v41 = vmul.f32 %v2099_v1, %v185_v38  ;;  %v198_v63 = vld [vmem:[%s2092_s6 + $0x100] sm:$0xff]  ;;  %v199_v4 = vld [vmem:[%s2092_s6 + $0x108] sm:$0xff] }
  0x47   : > { %1200 = vst [vmem:[%s2115_s21 + $0x40] sm:$0xff] %v688_v18  ;;  %1201 = vst [vmem:[%s2115_s21 + $0x48] sm:$0xff] %v689_v22  ;;  %v700_v42 = vmul.f32 %v2099_v1, %v186_v39  ;;  %v701_v46 = vmul.f32 %v2099_v1, %v187_v43  ;;  %v702_v47 = vmul.f32 %v2099_v1, %v188_v44  ;;  %v200_v5 = vld [vmem:[%s2092_s6 + $0x110] sm:$0xff]  ;;  %v201_v6 = vld [vmem:[%s2092_s6 + $0x118] sm:$0xff] }
  0x48   : > { %1202 = vst [vmem:[%s2115_s21 + $0x50] sm:$0xff] %v690_v23  ;;  %1203 = vst [vmem:[%s2115_s21 + $0x58] sm:$0xff] %v691_v24  ;;  %v703_v48 = vmul.f32 %v2099_v1, %v189_v45  ;;  %v704_v52 = vmul.f32 %v2099_v1, %v190_v49  ;;  %v705_v53 = vmul.f32 %v2099_v1, %v191_v50  ;;  %v202_v10 = vld [vmem:[%s2092_s6 + $0x120] sm:$0xff]  ;;  %v203_v11 = vld [vmem:[%s2092_s6 + $0x128] sm:$0xff] }
  0x49   : > { %1204 = vst [vmem:[%s2115_s21 + $0x60] sm:$0xff] %v692_v28  ;;  %1205 = vst [vmem:[%s2115_s21 + $0x68] sm:$0xff] %v693_v29  ;;  %v706_v54 = vmul.f32 %v2099_v1, %v192_v51  ;;  %v707_v58 = vmul.f32 %v2099_v1, %v193_v55  ;;  %v708_v59 = vmul.f32 %v2099_v1, %v194_v56  ;;  %v204_v12 = vld [vmem:[%s2092_s6 + $0x130] sm:$0xff]  ;;  %v205_v16 = vld [vmem:[%s2092_s6 + $0x138] sm:$0xff] }
  0x4a   : > { %1206 = vst [vmem:[%s2115_s21 + $0x70] sm:$0xff] %v694_v30  ;;  %1207 = vst [vmem:[%s2115_s21 + $0x78] sm:$0xff] %v695_v34  ;;  %v709_v60 = vmul.f32 %v2099_v1, %v195_v57  ;;  %v710_v0 = vmul.f32 %v2099_v1, %v196_v61  ;;  %v711_v2 = vmul.f32 %v2099_v1, %v197_v62  ;;  %v206_v17 = vld [vmem:[%s2092_s6 + $0x140] sm:$0xff]  ;;  %v207_v18 = vld [vmem:[%s2092_s6 + $0x148] sm:$0xff] }
  0x4b   : > { %1208 = vst [vmem:[%s2115_s21 + $0x80] sm:$0xff] %v696_v35  ;;  %1209 = vst [vmem:[%s2115_s21 + $0x88] sm:$0xff] %v697_v36  ;;  %v712_v3 = vmul.f32 %v2099_v1, %v198_v63  ;;  %v713_v7 = vmul.f32 %v2099_v1, %v199_v4  ;;  %v714_v8 = vmul.f32 %v2099_v1, %v200_v5  ;;  %v208_v22 = vld [vmem:[%s2092_s6 + $0x150] sm:$0xff]  ;;  %v209_v23 = vld [vmem:[%s2092_s6 + $0x158] sm:$0xff] }
  0x4c   : > { %1210 = vst [vmem:[%s2115_s21 + $0x90] sm:$0xff] %v698_v40  ;;  %1211 = vst [vmem:[%s2115_s21 + $0x98] sm:$0xff] %v699_v41  ;;  %v715_v9 = vmul.f32 %v2099_v1, %v201_v6  ;;  %v716_v13 = vmul.f32 %v2099_v1, %v202_v10  ;;  %v717_v14 = vmul.f32 %v2099_v1, %v203_v11  ;;  %v210_v24 = vld [vmem:[%s2092_s6 + $0x160] sm:$0xff]  ;;  %v211_v28 = vld [vmem:[%s2092_s6 + $0x168] sm:$0xff] }
  0x4d   : > { %1212 = vst [vmem:[%s2115_s21 + $0xa0] sm:$0xff] %v700_v42  ;;  %1213 = vst [vmem:[%s2115_s21 + $0xa8] sm:$0xff] %v701_v46  ;;  %v718_v15 = vmul.f32 %v2099_v1, %v204_v12  ;;  %v719_v19 = vmul.f32 %v2099_v1, %v205_v16  ;;  %v720_v20 = vmul.f32 %v2099_v1, %v206_v17  ;;  %v212_v29 = vld [vmem:[%s2092_s6 + $0x170] sm:$0xff]  ;;  %v213_v30 = vld [vmem:[%s2092_s6 + $0x178] sm:$0xff] }
  0x4e   : > { %1214 = vst [vmem:[%s2115_s21 + $0xb0] sm:$0xff] %v702_v47  ;;  %1215 = vst [vmem:[%s2115_s21 + $0xb8] sm:$0xff] %v703_v48  ;;  %v721_v21 = vmul.f32 %v2099_v1, %v207_v18  ;;  %v722_v25 = vmul.f32 %v2099_v1, %v208_v22  ;;  %v723_v26 = vmul.f32 %v2099_v1, %v209_v23  ;;  %v214_v34 = vld [vmem:[%s2092_s6 + $0x180] sm:$0xff]  ;;  %v215_v35 = vld [vmem:[%s2092_s6 + $0x188] sm:$0xff] }
  0x4f   : > { %1216 = vst [vmem:[%s2115_s21 + $0xc0] sm:$0xff] %v704_v52  ;;  %1217 = vst [vmem:[%s2115_s21 + $0xc8] sm:$0xff] %v705_v53  ;;  %v724_v27 = vmul.f32 %v2099_v1, %v210_v24  ;;  %v725_v31 = vmul.f32 %v2099_v1, %v211_v28  ;;  %v726_v32 = vmul.f32 %v2099_v1, %v212_v29  ;;  %v216_v36 = vld [vmem:[%s2092_s6 + $0x190] sm:$0xff]  ;;  %v217_v40 = vld [vmem:[%s2092_s6 + $0x198] sm:$0xff] }
  0x50   : > { %1218 = vst [vmem:[%s2115_s21 + $0xd0] sm:$0xff] %v706_v54  ;;  %1219 = vst [vmem:[%s2115_s21 + $0xd8] sm:$0xff] %v707_v58  ;;  %v727_v33 = vmul.f32 %v2099_v1, %v213_v30  ;;  %v728_v37 = vmul.f32 %v2099_v1, %v214_v34  ;;  %v729_v38 = vmul.f32 %v2099_v1, %v215_v35  ;;  %v218_v41 = vld [vmem:[%s2092_s6 + $0x1a0] sm:$0xff]  ;;  %v219_v42 = vld [vmem:[%s2092_s6 + $0x1a8] sm:$0xff] }
  0x51   : > { %1220 = vst [vmem:[%s2115_s21 + $0xe0] sm:$0xff] %v708_v59  ;;  %1221 = vst [vmem:[%s2115_s21 + $0xe8] sm:$0xff] %v709_v60  ;;  %v730_v39 = vmul.f32 %v2099_v1, %v216_v36  ;;  %v731_v43 = vmul.f32 %v2099_v1, %v217_v40  ;;  %v732_v44 = vmul.f32 %v2099_v1, %v218_v41  ;;  %v220_v46 = vld [vmem:[%s2092_s6 + $0x1b0] sm:$0xff]  ;;  %v221_v47 = vld [vmem:[%s2092_s6 + $0x1b8] sm:$0xff] }
  0x52   : > { %1222 = vst [vmem:[%s2115_s21 + $0xf0] sm:$0xff] %v710_v0  ;;  %1223 = vst [vmem:[%s2115_s21 + $0xf8] sm:$0xff] %v711_v2  ;;  %v733_v45 = vmul.f32 %v2099_v1, %v219_v42  ;;  %v222_v48 = vld [vmem:[%s2092_s6 + $0x1c0] sm:$0xff]  ;;  %v734_v49 = vmul.f32 %v2099_v1, %v220_v46  ;;  %v735_v50 = vmul.f32 %v2099_v1, %v221_v47  ;;  %v223_v52 = vld [vmem:[%s2092_s6 + $0x1c8] sm:$0xff] }
  0x53   : > { %1224 = vst [vmem:[%s2115_s21 + $0x100] sm:$0xff] %v712_v3  ;;  %1225 = vst [vmem:[%s2115_s21 + $0x108] sm:$0xff] %v713_v7  ;;  %v736_v51 = vmul.f32 %v2099_v1, %v222_v48  ;;  %v224_v53 = vld [vmem:[%s2092_s6 + $0x1d0] sm:$0xff]  ;;  %v225_v54 = vld [vmem:[%s2092_s6 + $0x1d8] sm:$0xff]  ;;  %v737_v55 = vmul.f32 %v2099_v1, %v223_v52 }
  0x54   : > { %1226 = vst [vmem:[%s2115_s21 + $0x110] sm:$0xff] %v714_v8  ;;  %1227 = vst [vmem:[%s2115_s21 + $0x118] sm:$0xff] %v715_v9  ;;  %v738_v56 = vmul.f32 %v2099_v1, %v224_v53  ;;  %v739_v57 = vmul.f32 %v2099_v1, %v225_v54  ;;  %v226_v58 = vld [vmem:[%s2092_s6 + $0x1e0] sm:$0xff]  ;;  %v227_v59 = vld [vmem:[%s2092_s6 + $0x1e8] sm:$0xff] }
  0x55   : > { %1228 = vst [vmem:[%s2115_s21 + $0x120] sm:$0xff] %v716_v13  ;;  %1229 = vst [vmem:[%s2115_s21 + $0x128] sm:$0xff] %v717_v14  ;;  %v228_v60 = vld [vmem:[%s2092_s6 + $0x1f0] sm:$0xff]  ;;  %v740_v61 = vmul.f32 %v2099_v1, %v226_v58  ;;  %v741_v62 = vmul.f32 %v2099_v1, %v227_v59  ;;  %v229_v0 = vld [vmem:[%s2092_s6 + $0x1f8] sm:$0xff] }
  0x56   : > { %1230 = vst [vmem:[%s2115_s21 + $0x130] sm:$0xff] %v718_v15  ;;  %1231 = vst [vmem:[%s2115_s21 + $0x138] sm:$0xff] %v719_v19  ;;  %v742_v63 = vmul.f32 %v2099_v1, %v228_v60  ;;  %v230_v2 = vld [vmem:[%s2092_s6 + $0x200] sm:$0xff]  ;;  %v231_v3 = vld [vmem:[%s2092_s6 + $0x208] sm:$0xff]  ;;  %v743_v4 = vmul.f32 %v2099_v1, %v229_v0 }
  0x57   : > { %1232 = vst [vmem:[%s2115_s21 + $0x140] sm:$0xff] %v720_v20  ;;  %1233 = vst [vmem:[%s2115_s21 + $0x148] sm:$0xff] %v721_v21  ;;  %v744_v5 = vmul.f32 %v2099_v1, %v230_v2  ;;  %v745_v6 = vmul.f32 %v2099_v1, %v231_v3  ;;  %v232_v7 = vld [vmem:[%s2092_s6 + $0x210] sm:$0xff]  ;;  %v233_v8 = vld [vmem:[%s2092_s6 + $0x218] sm:$0xff] }
  0x58   : > { %1234 = vst [vmem:[%s2115_s21 + $0x150] sm:$0xff] %v722_v25  ;;  %1235 = vst [vmem:[%s2115_s21 + $0x158] sm:$0xff] %v723_v26  ;;  %v234_v9 = vld [vmem:[%s2092_s6 + $0x220] sm:$0xff]  ;;  %v746_v10 = vmul.f32 %v2099_v1, %v232_v7  ;;  %v747_v11 = vmul.f32 %v2099_v1, %v233_v8  ;;  %v235_v13 = vld [vmem:[%s2092_s6 + $0x228] sm:$0xff] }
  0x59   : > { %1236 = vst [vmem:[%s2115_s21 + $0x160] sm:$0xff] %v724_v27  ;;  %1237 = vst [vmem:[%s2115_s21 + $0x168] sm:$0xff] %v725_v31  ;;  %v748_v12 = vmul.f32 %v2099_v1, %v234_v9  ;;  %v236_v14 = vld [vmem:[%s2092_s6 + $0x230] sm:$0xff]  ;;  %v237_v15 = vld [vmem:[%s2092_s6 + $0x238] sm:$0xff]  ;;  %v749_v16 = vmul.f32 %v2099_v1, %v235_v13 }
  0x5a   : > { %1238 = vst [vmem:[%s2115_s21 + $0x170] sm:$0xff] %v726_v32  ;;  %1239 = vst [vmem:[%s2115_s21 + $0x178] sm:$0xff] %v727_v33  ;;  %v750_v17 = vmul.f32 %v2099_v1, %v236_v14  ;;  %v751_v18 = vmul.f32 %v2099_v1, %v237_v15  ;;  %v238_v19 = vld [vmem:[%s2092_s6 + $0x240] sm:$0xff]  ;;  %v239_v20 = vld [vmem:[%s2092_s6 + $0x248] sm:$0xff] }
  0x5b   : > { %1240 = vst [vmem:[%s2115_s21 + $0x180] sm:$0xff] %v728_v37  ;;  %1241 = vst [vmem:[%s2115_s21 + $0x188] sm:$0xff] %v729_v38  ;;  %v240_v21 = vld [vmem:[%s2092_s6 + $0x250] sm:$0xff]  ;;  %v752_v22 = vmul.f32 %v2099_v1, %v238_v19  ;;  %v753_v23 = vmul.f32 %v2099_v1, %v239_v20  ;;  %v241_v25 = vld [vmem:[%s2092_s6 + $0x258] sm:$0xff] }
  0x5c   : > { %1242 = vst [vmem:[%s2115_s21 + $0x190] sm:$0xff] %v730_v39  ;;  %1243 = vst [vmem:[%s2115_s21 + $0x198] sm:$0xff] %v731_v43  ;;  %v754_v24 = vmul.f32 %v2099_v1, %v240_v21  ;;  %v242_v26 = vld [vmem:[%s2092_s6 + $0x260] sm:$0xff]  ;;  %v243_v27 = vld [vmem:[%s2092_s6 + $0x268] sm:$0xff]  ;;  %v755_v28 = vmul.f32 %v2099_v1, %v241_v25 }
  0x5d   : > { %1244 = vst [vmem:[%s2115_s21 + $0x1a0] sm:$0xff] %v732_v44  ;;  %1245 = vst [vmem:[%s2115_s21 + $0x1a8] sm:$0xff] %v733_v45  ;;  %v756_v29 = vmul.f32 %v2099_v1, %v242_v26  ;;  %v757_v30 = vmul.f32 %v2099_v1, %v243_v27  ;;  %v244_v31 = vld [vmem:[%s2092_s6 + $0x270] sm:$0xff]  ;;  %v245_v32 = vld [vmem:[%s2092_s6 + $0x278] sm:$0xff] }
  0x5e   : > { %1246 = vst [vmem:[%s2115_s21 + $0x1b0] sm:$0xff] %v734_v49  ;;  %1247 = vst [vmem:[%s2115_s21 + $0x1b8] sm:$0xff] %v735_v50  ;;  %v246_v33 = vld [vmem:[%s2092_s6 + $0x280] sm:$0xff]  ;;  %v758_v34 = vmul.f32 %v2099_v1, %v244_v31  ;;  %v759_v35 = vmul.f32 %v2099_v1, %v245_v32  ;;  %v247_v37 = vld [vmem:[%s2092_s6 + $0x288] sm:$0xff] }
  0x5f   : > { %1248 = vst [vmem:[%s2115_s21 + $0x1c0] sm:$0xff] %v736_v51  ;;  %1249 = vst [vmem:[%s2115_s21 + $0x1c8] sm:$0xff] %v737_v55  ;;  %v760_v36 = vmul.f32 %v2099_v1, %v246_v33  ;;  %v248_v38 = vld [vmem:[%s2092_s6 + $0x290] sm:$0xff]  ;;  %v249_v39 = vld [vmem:[%s2092_s6 + $0x298] sm:$0xff]  ;;  %v761_v40 = vmul.f32 %v2099_v1, %v247_v37 }
  0x60   : > { %1250 = vst [vmem:[%s2115_s21 + $0x1d0] sm:$0xff] %v738_v56  ;;  %1251 = vst [vmem:[%s2115_s21 + $0x1d8] sm:$0xff] %v739_v57  ;;  %v762_v41 = vmul.f32 %v2099_v1, %v248_v38  ;;  %v763_v42 = vmul.f32 %v2099_v1, %v249_v39  ;;  %v250_v43 = vld [vmem:[%s2092_s6 + $0x2a0] sm:$0xff]  ;;  %v251_v44 = vld [vmem:[%s2092_s6 + $0x2a8] sm:$0xff] }
  0x61   : > { %1252 = vst [vmem:[%s2115_s21 + $0x1e0] sm:$0xff] %v740_v61  ;;  %1253 = vst [vmem:[%s2115_s21 + $0x1e8] sm:$0xff] %v741_v62  ;;  %v252_v45 = vld [vmem:[%s2092_s6 + $0x2b0] sm:$0xff]  ;;  %v764_v46 = vmul.f32 %v2099_v1, %v250_v43  ;;  %v765_v47 = vmul.f32 %v2099_v1, %v251_v44  ;;  %v253_v49 = vld [vmem:[%s2092_s6 + $0x2b8] sm:$0xff] }
  0x62   : > { %1254 = vst [vmem:[%s2115_s21 + $0x1f0] sm:$0xff] %v742_v63  ;;  %1255 = vst [vmem:[%s2115_s21 + $0x1f8] sm:$0xff] %v743_v4  ;;  %v766_v48 = vmul.f32 %v2099_v1, %v252_v45  ;;  %v254_v50 = vld [vmem:[%s2092_s6 + $0x2c0] sm:$0xff]  ;;  %v255_v51 = vld [vmem:[%s2092_s6 + $0x2c8] sm:$0xff]  ;;  %v767_v52 = vmul.f32 %v2099_v1, %v253_v49 }
  0x63   : > { %1256 = vst [vmem:[%s2115_s21 + $0x200] sm:$0xff] %v744_v5  ;;  %1257 = vst [vmem:[%s2115_s21 + $0x208] sm:$0xff] %v745_v6  ;;  %v768_v53 = vmul.f32 %v2099_v1, %v254_v50  ;;  %v769_v54 = vmul.f32 %v2099_v1, %v255_v51  ;;  %v256_v55 = vld [vmem:[%s2092_s6 + $0x2d0] sm:$0xff]  ;;  %v257_v56 = vld [vmem:[%s2092_s6 + $0x2d8] sm:$0xff] }
  0x64   : > { %1258 = vst [vmem:[%s2115_s21 + $0x210] sm:$0xff] %v746_v10  ;;  %1259 = vst [vmem:[%s2115_s21 + $0x218] sm:$0xff] %v747_v11  ;;  %v258_v57 = vld [vmem:[%s2092_s6 + $0x2e0] sm:$0xff]  ;;  %v770_v58 = vmul.f32 %v2099_v1, %v256_v55  ;;  %v771_v59 = vmul.f32 %v2099_v1, %v257_v56  ;;  %v259_v61 = vld [vmem:[%s2092_s6 + $0x2e8] sm:$0xff] }
  0x65   : > { %1260 = vst [vmem:[%s2115_s21 + $0x220] sm:$0xff] %v748_v12  ;;  %1261 = vst [vmem:[%s2115_s21 + $0x228] sm:$0xff] %v749_v16  ;;  %v772_v60 = vmul.f32 %v2099_v1, %v258_v57  ;;  %v260_v62 = vld [vmem:[%s2092_s6 + $0x2f0] sm:$0xff]  ;;  %v261_v63 = vld [vmem:[%s2092_s6 + $0x2f8] sm:$0xff]  ;;  %v773_v0 = vmul.f32 %v2099_v1, %v259_v61 }
  0x66   : > { %1262 = vst [vmem:[%s2115_s21 + $0x230] sm:$0xff] %v750_v17  ;;  %1263 = vst [vmem:[%s2115_s21 + $0x238] sm:$0xff] %v751_v18  ;;  %v774_v2 = vmul.f32 %v2099_v1, %v260_v62  ;;  %v775_v3 = vmul.f32 %v2099_v1, %v261_v63  ;;  %v262_v4 = vld [vmem:[%s2092_s6 + $0x300] sm:$0xff]  ;;  %v263_v5 = vld [vmem:[%s2092_s6 + $0x308] sm:$0xff] }
  0x67   : > { %1264 = vst [vmem:[%s2115_s21 + $0x240] sm:$0xff] %v752_v22  ;;  %1265 = vst [vmem:[%s2115_s21 + $0x248] sm:$0xff] %v753_v23  ;;  %v264_v6 = vld [vmem:[%s2092_s6 + $0x310] sm:$0xff]  ;;  %v776_v7 = vmul.f32 %v2099_v1, %v262_v4  ;;  %v777_v8 = vmul.f32 %v2099_v1, %v263_v5  ;;  %v265_v10 = vld [vmem:[%s2092_s6 + $0x318] sm:$0xff] }
  0x68   : > { %1266 = vst [vmem:[%s2115_s21 + $0x250] sm:$0xff] %v754_v24  ;;  %1267 = vst [vmem:[%s2115_s21 + $0x258] sm:$0xff] %v755_v28  ;;  %v778_v9 = vmul.f32 %v2099_v1, %v264_v6  ;;  %v266_v11 = vld [vmem:[%s2092_s6 + $0x320] sm:$0xff]  ;;  %v267_v12 = vld [vmem:[%s2092_s6 + $0x328] sm:$0xff]  ;;  %v779_v13 = vmul.f32 %v2099_v1, %v265_v10 }
  0x69   : > { %1268 = vst [vmem:[%s2115_s21 + $0x260] sm:$0xff] %v756_v29  ;;  %1269 = vst [vmem:[%s2115_s21 + $0x268] sm:$0xff] %v757_v30  ;;  %v780_v14 = vmul.f32 %v2099_v1, %v266_v11  ;;  %v781_v15 = vmul.f32 %v2099_v1, %v267_v12  ;;  %v268_v16 = vld [vmem:[%s2092_s6 + $0x330] sm:$0xff]  ;;  %v269_v17 = vld [vmem:[%s2092_s6 + $0x338] sm:$0xff] }
  0x6a   : > { %1270 = vst [vmem:[%s2115_s21 + $0x270] sm:$0xff] %v758_v34  ;;  %1271 = vst [vmem:[%s2115_s21 + $0x278] sm:$0xff] %v759_v35  ;;  %v270_v18 = vld [vmem:[%s2092_s6 + $0x340] sm:$0xff]  ;;  %v782_v19 = vmul.f32 %v2099_v1, %v268_v16  ;;  %v783_v20 = vmul.f32 %v2099_v1, %v269_v17  ;;  %v271_v22 = vld [vmem:[%s2092_s6 + $0x348] sm:$0xff] }
  0x6b   : > { %1272 = vst [vmem:[%s2115_s21 + $0x280] sm:$0xff] %v760_v36  ;;  %1273 = vst [vmem:[%s2115_s21 + $0x288] sm:$0xff] %v761_v40  ;;  %v784_v21 = vmul.f32 %v2099_v1, %v270_v18  ;;  %v272_v23 = vld [vmem:[%s2092_s6 + $0x350] sm:$0xff]  ;;  %v273_v24 = vld [vmem:[%s2092_s6 + $0x358] sm:$0xff]  ;;  %v785_v25 = vmul.f32 %v2099_v1, %v271_v22 }
  0x6c   : > { %1274 = vst [vmem:[%s2115_s21 + $0x290] sm:$0xff] %v762_v41  ;;  %1275 = vst [vmem:[%s2115_s21 + $0x298] sm:$0xff] %v763_v42  ;;  %v786_v26 = vmul.f32 %v2099_v1, %v272_v23  ;;  %v787_v27 = vmul.f32 %v2099_v1, %v273_v24  ;;  %v274_v28 = vld [vmem:[%s2092_s6 + $0x360] sm:$0xff]  ;;  %v275_v29 = vld [vmem:[%s2092_s6 + $0x368] sm:$0xff] }
  0x6d   : > { %1276 = vst [vmem:[%s2115_s21 + $0x2a0] sm:$0xff] %v764_v46  ;;  %1277 = vst [vmem:[%s2115_s21 + $0x2a8] sm:$0xff] %v765_v47  ;;  %v276_v30 = vld [vmem:[%s2092_s6 + $0x370] sm:$0xff]  ;;  %v788_v31 = vmul.f32 %v2099_v1, %v274_v28  ;;  %v789_v32 = vmul.f32 %v2099_v1, %v275_v29  ;;  %v277_v34 = vld [vmem:[%s2092_s6 + $0x378] sm:$0xff] }
  0x6e   : > { %1278 = vst [vmem:[%s2115_s21 + $0x2b0] sm:$0xff] %v766_v48  ;;  %1279 = vst [vmem:[%s2115_s21 + $0x2b8] sm:$0xff] %v767_v52  ;;  %v790_v33 = vmul.f32 %v2099_v1, %v276_v30  ;;  %v278_v35 = vld [vmem:[%s2092_s6 + $0x380] sm:$0xff]  ;;  %v279_v36 = vld [vmem:[%s2092_s6 + $0x388] sm:$0xff]  ;;  %v791_v37 = vmul.f32 %v2099_v1, %v277_v34 }
  0x6f   : > { %1280 = vst [vmem:[%s2115_s21 + $0x2c0] sm:$0xff] %v768_v53  ;;  %1281 = vst [vmem:[%s2115_s21 + $0x2c8] sm:$0xff] %v769_v54  ;;  %v792_v38 = vmul.f32 %v2099_v1, %v278_v35  ;;  %v793_v39 = vmul.f32 %v2099_v1, %v279_v36  ;;  %v280_v40 = vld [vmem:[%s2092_s6 + $0x390] sm:$0xff]  ;;  %v281_v41 = vld [vmem:[%s2092_s6 + $0x398] sm:$0xff] }
  0x70   : > { %1282 = vst [vmem:[%s2115_s21 + $0x2d0] sm:$0xff] %v770_v58  ;;  %1283 = vst [vmem:[%s2115_s21 + $0x2d8] sm:$0xff] %v771_v59  ;;  %v282_v42 = vld [vmem:[%s2092_s6 + $0x3a0] sm:$0xff]  ;;  %v794_v43 = vmul.f32 %v2099_v1, %v280_v40  ;;  %v795_v44 = vmul.f32 %v2099_v1, %v281_v41  ;;  %v283_v46 = vld [vmem:[%s2092_s6 + $0x3a8] sm:$0xff] }
  0x71   : > { %1284 = vst [vmem:[%s2115_s21 + $0x2e0] sm:$0xff] %v772_v60  ;;  %1285 = vst [vmem:[%s2115_s21 + $0x2e8] sm:$0xff] %v773_v0  ;;  %v796_v45 = vmul.f32 %v2099_v1, %v282_v42  ;;  %v284_v47 = vld [vmem:[%s2092_s6 + $0x3b0] sm:$0xff]  ;;  %v285_v48 = vld [vmem:[%s2092_s6 + $0x3b8] sm:$0xff]  ;;  %v797_v49 = vmul.f32 %v2099_v1, %v283_v46 }
  0x72   : > { %1286 = vst [vmem:[%s2115_s21 + $0x2f0] sm:$0xff] %v774_v2  ;;  %1287 = vst [vmem:[%s2115_s21 + $0x2f8] sm:$0xff] %v775_v3  ;;  %v798_v50 = vmul.f32 %v2099_v1, %v284_v47  ;;  %v799_v51 = vmul.f32 %v2099_v1, %v285_v48  ;;  %v286_v52 = vld [vmem:[%s2092_s6 + $0x3c0] sm:$0xff]  ;;  %v287_v53 = vld [vmem:[%s2092_s6 + $0x3c8] sm:$0xff] }
  0x73   : > { %1288 = vst [vmem:[%s2115_s21 + $0x300] sm:$0xff] %v776_v7  ;;  %1289 = vst [vmem:[%s2115_s21 + $0x308] sm:$0xff] %v777_v8  ;;  %v288_v54 = vld [vmem:[%s2092_s6 + $0x3d0] sm:$0xff]  ;;  %v800_v55 = vmul.f32 %v2099_v1, %v286_v52  ;;  %v801_v56 = vmul.f32 %v2099_v1, %v287_v53  ;;  %v289_v58 = vld [vmem:[%s2092_s6 + $0x3d8] sm:$0xff] }
  0x74   : > { %1290 = vst [vmem:[%s2115_s21 + $0x310] sm:$0xff] %v778_v9  ;;  %1291 = vst [vmem:[%s2115_s21 + $0x318] sm:$0xff] %v779_v13  ;;  %v802_v57 = vmul.f32 %v2099_v1, %v288_v54  ;;  %v290_v59 = vld [vmem:[%s2092_s6 + $0x3e0] sm:$0xff]  ;;  %v291_v60 = vld [vmem:[%s2092_s6 + $0x3e8] sm:$0xff]  ;;  %v803_v61 = vmul.f32 %v2099_v1, %v289_v58 }
  0x75   : > { %1292 = vst [vmem:[%s2115_s21 + $0x320] sm:$0xff] %v780_v14  ;;  %1293 = vst [vmem:[%s2115_s21 + $0x328] sm:$0xff] %v781_v15  ;;  %v804_v62 = vmul.f32 %v2099_v1, %v290_v59  ;;  %v805_v63 = vmul.f32 %v2099_v1, %v291_v60  ;;  %v292_v0 = vld [vmem:[%s2092_s6 + $0x3f0] sm:$0xff]  ;;  %v293_v2 = vld [vmem:[%s2092_s6 + $0x3f8] sm:$0xff] }
  0x76   : > { %1294 = vst [vmem:[%s2115_s21 + $0x330] sm:$0xff] %v782_v19  ;;  %1295 = vst [vmem:[%s2115_s21 + $0x338] sm:$0xff] %v783_v20  ;;  %v294_v3 = vld [vmem:[%s2092_s6 + $0x400] sm:$0xff]  ;;  %v806_v4 = vmul.f32 %v2099_v1, %v292_v0  ;;  %v807_v5 = vmul.f32 %v2099_v1, %v293_v2  ;;  %v295_v7 = vld [vmem:[%s2092_s6 + $0x408] sm:$0xff] }
  0x77   : > { %1296 = vst [vmem:[%s2115_s21 + $0x340] sm:$0xff] %v784_v21  ;;  %1297 = vst [vmem:[%s2115_s21 + $0x348] sm:$0xff] %v785_v25  ;;  %v808_v6 = vmul.f32 %v2099_v1, %v294_v3  ;;  %v296_v8 = vld [vmem:[%s2092_s6 + $0x410] sm:$0xff]  ;;  %v297_v9 = vld [vmem:[%s2092_s6 + $0x418] sm:$0xff]  ;;  %v809_v10 = vmul.f32 %v2099_v1, %v295_v7 }
  0x78   : > { %1298 = vst [vmem:[%s2115_s21 + $0x350] sm:$0xff] %v786_v26  ;;  %1299 = vst [vmem:[%s2115_s21 + $0x358] sm:$0xff] %v787_v27  ;;  %v810_v11 = vmul.f32 %v2099_v1, %v296_v8  ;;  %v811_v12 = vmul.f32 %v2099_v1, %v297_v9  ;;  %v298_v13 = vld [vmem:[%s2092_s6 + $0x420] sm:$0xff]  ;;  %v299_v14 = vld [vmem:[%s2092_s6 + $0x428] sm:$0xff] }
  0x79   : > { %1300 = vst [vmem:[%s2115_s21 + $0x360] sm:$0xff] %v788_v31  ;;  %1301 = vst [vmem:[%s2115_s21 + $0x368] sm:$0xff] %v789_v32  ;;  %v300_v15 = vld [vmem:[%s2092_s6 + $0x430] sm:$0xff]  ;;  %v812_v16 = vmul.f32 %v2099_v1, %v298_v13  ;;  %v813_v17 = vmul.f32 %v2099_v1, %v299_v14  ;;  %v301_v19 = vld [vmem:[%s2092_s6 + $0x438] sm:$0xff] }
  0x7a   : > { %1302 = vst [vmem:[%s2115_s21 + $0x370] sm:$0xff] %v790_v33  ;;  %1303 = vst [vmem:[%s2115_s21 + $0x378] sm:$0xff] %v791_v37  ;;  %v814_v18 = vmul.f32 %v2099_v1, %v300_v15  ;;  %v302_v20 = vld [vmem:[%s2092_s6 + $0x440] sm:$0xff]  ;;  %v303_v21 = vld [vmem:[%s2092_s6 + $0x448] sm:$0xff]  ;;  %v815_v22 = vmul.f32 %v2099_v1, %v301_v19 }
  0x7b   : > { %1304 = vst [vmem:[%s2115_s21 + $0x380] sm:$0xff] %v792_v38  ;;  %1305 = vst [vmem:[%s2115_s21 + $0x388] sm:$0xff] %v793_v39  ;;  %v816_v23 = vmul.f32 %v2099_v1, %v302_v20  ;;  %v817_v24 = vmul.f32 %v2099_v1, %v303_v21  ;;  %v304_v25 = vld [vmem:[%s2092_s6 + $0x450] sm:$0xff]  ;;  %v305_v26 = vld [vmem:[%s2092_s6 + $0x458] sm:$0xff] }
  0x7c   : > { %1306 = vst [vmem:[%s2115_s21 + $0x390] sm:$0xff] %v794_v43  ;;  %1307 = vst [vmem:[%s2115_s21 + $0x398] sm:$0xff] %v795_v44  ;;  %v306_v27 = vld [vmem:[%s2092_s6 + $0x460] sm:$0xff]  ;;  %v818_v28 = vmul.f32 %v2099_v1, %v304_v25  ;;  %v819_v29 = vmul.f32 %v2099_v1, %v305_v26  ;;  %v307_v31 = vld [vmem:[%s2092_s6 + $0x468] sm:$0xff] }
  0x7d   : > { %1308 = vst [vmem:[%s2115_s21 + $0x3a0] sm:$0xff] %v796_v45  ;;  %1309 = vst [vmem:[%s2115_s21 + $0x3a8] sm:$0xff] %v797_v49  ;;  %v820_v30 = vmul.f32 %v2099_v1, %v306_v27  ;;  %v308_v32 = vld [vmem:[%s2092_s6 + $0x470] sm:$0xff]  ;;  %v309_v33 = vld [vmem:[%s2092_s6 + $0x478] sm:$0xff]  ;;  %v821_v34 = vmul.f32 %v2099_v1, %v307_v31 }
  0x7e   : > { %1310 = vst [vmem:[%s2115_s21 + $0x3b0] sm:$0xff] %v798_v50  ;;  %1311 = vst [vmem:[%s2115_s21 + $0x3b8] sm:$0xff] %v799_v51  ;;  %v822_v35 = vmul.f32 %v2099_v1, %v308_v32  ;;  %v823_v36 = vmul.f32 %v2099_v1, %v309_v33  ;;  %v310_v37 = vld [vmem:[%s2092_s6 + $0x480] sm:$0xff]  ;;  %v311_v38 = vld [vmem:[%s2092_s6 + $0x488] sm:$0xff] }
  0x7f   : > { %1312 = vst [vmem:[%s2115_s21 + $0x3c0] sm:$0xff] %v800_v55  ;;  %1313 = vst [vmem:[%s2115_s21 + $0x3c8] sm:$0xff] %v801_v56  ;;  %v312_v39 = vld [vmem:[%s2092_s6 + $0x490] sm:$0xff]  ;;  %v824_v40 = vmul.f32 %v2099_v1, %v310_v37  ;;  %v825_v41 = vmul.f32 %v2099_v1, %v311_v38  ;;  %v313_v43 = vld [vmem:[%s2092_s6 + $0x498] sm:$0xff] }
  0x80   : > { %1314 = vst [vmem:[%s2115_s21 + $0x3d0] sm:$0xff] %v802_v57  ;;  %1315 = vst [vmem:[%s2115_s21 + $0x3d8] sm:$0xff] %v803_v61  ;;  %v826_v42 = vmul.f32 %v2099_v1, %v312_v39  ;;  %v314_v44 = vld [vmem:[%s2092_s6 + $0x4a0] sm:$0xff]  ;;  %v315_v45 = vld [vmem:[%s2092_s6 + $0x4a8] sm:$0xff]  ;;  %v827_v46 = vmul.f32 %v2099_v1, %v313_v43 }
  0x81   : > { %1316 = vst [vmem:[%s2115_s21 + $0x3e0] sm:$0xff] %v804_v62  ;;  %1317 = vst [vmem:[%s2115_s21 + $0x3e8] sm:$0xff] %v805_v63  ;;  %v828_v47 = vmul.f32 %v2099_v1, %v314_v44  ;;  %v829_v48 = vmul.f32 %v2099_v1, %v315_v45  ;;  %v316_v49 = vld [vmem:[%s2092_s6 + $0x4b0] sm:$0xff]  ;;  %v317_v50 = vld [vmem:[%s2092_s6 + $0x4b8] sm:$0xff] }
  0x82   : > { %1318 = vst [vmem:[%s2115_s21 + $0x3f0] sm:$0xff] %v806_v4  ;;  %1319 = vst [vmem:[%s2115_s21 + $0x3f8] sm:$0xff] %v807_v5  ;;  %v318_v51 = vld [vmem:[%s2092_s6 + $0x4c0] sm:$0xff]  ;;  %v830_v52 = vmul.f32 %v2099_v1, %v316_v49  ;;  %v831_v53 = vmul.f32 %v2099_v1, %v317_v50  ;;  %v319_v55 = vld [vmem:[%s2092_s6 + $0x4c8] sm:$0xff] }
  0x83   : > { %1320 = vst [vmem:[%s2115_s21 + $0x400] sm:$0xff] %v808_v6  ;;  %1321 = vst [vmem:[%s2115_s21 + $0x408] sm:$0xff] %v809_v10  ;;  %v832_v54 = vmul.f32 %v2099_v1, %v318_v51  ;;  %v320_v56 = vld [vmem:[%s2092_s6 + $0x4d0] sm:$0xff]  ;;  %v321_v57 = vld [vmem:[%s2092_s6 + $0x4d8] sm:$0xff]  ;;  %v833_v58 = vmul.f32 %v2099_v1, %v319_v55 }
  0x84   : > { %1322 = vst [vmem:[%s2115_s21 + $0x410] sm:$0xff] %v810_v11  ;;  %1323 = vst [vmem:[%s2115_s21 + $0x418] sm:$0xff] %v811_v12  ;;  %v834_v59 = vmul.f32 %v2099_v1, %v320_v56  ;;  %v835_v60 = vmul.f32 %v2099_v1, %v321_v57  ;;  %v322_v61 = vld [vmem:[%s2092_s6 + $0x4e0] sm:$0xff]  ;;  %v323_v62 = vld [vmem:[%s2092_s6 + $0x4e8] sm:$0xff] }
  0x85   : > { %1324 = vst [vmem:[%s2115_s21 + $0x420] sm:$0xff] %v812_v16  ;;  %1325 = vst [vmem:[%s2115_s21 + $0x428] sm:$0xff] %v813_v17  ;;  %v324_v63 = vld [vmem:[%s2092_s6 + $0x4f0] sm:$0xff]  ;;  %v836_v0 = vmul.f32 %v2099_v1, %v322_v61  ;;  %v837_v2 = vmul.f32 %v2099_v1, %v323_v62  ;;  %v325_v4 = vld [vmem:[%s2092_s6 + $0x4f8] sm:$0xff] }
  0x86   : > { %1326 = vst [vmem:[%s2115_s21 + $0x430] sm:$0xff] %v814_v18  ;;  %1327 = vst [vmem:[%s2115_s21 + $0x438] sm:$0xff] %v815_v22  ;;  %v838_v3 = vmul.f32 %v2099_v1, %v324_v63  ;;  %v326_v5 = vld [vmem:[%s2092_s6 + $0x500] sm:$0xff]  ;;  %v327_v6 = vld [vmem:[%s2092_s6 + $0x508] sm:$0xff]  ;;  %v839_v7 = vmul.f32 %v2099_v1, %v325_v4 }
  0x87   : > { %1328 = vst [vmem:[%s2115_s21 + $0x440] sm:$0xff] %v816_v23  ;;  %1329 = vst [vmem:[%s2115_s21 + $0x448] sm:$0xff] %v817_v24  ;;  %v840_v8 = vmul.f32 %v2099_v1, %v326_v5  ;;  %v841_v9 = vmul.f32 %v2099_v1, %v327_v6  ;;  %v328_v10 = vld [vmem:[%s2092_s6 + $0x510] sm:$0xff]  ;;  %v329_v11 = vld [vmem:[%s2092_s6 + $0x518] sm:$0xff] }
  0x88   : > { %1330 = vst [vmem:[%s2115_s21 + $0x450] sm:$0xff] %v818_v28  ;;  %1331 = vst [vmem:[%s2115_s21 + $0x458] sm:$0xff] %v819_v29  ;;  %v330_v12 = vld [vmem:[%s2092_s6 + $0x520] sm:$0xff]  ;;  %v842_v13 = vmul.f32 %v2099_v1, %v328_v10  ;;  %v843_v14 = vmul.f32 %v2099_v1, %v329_v11  ;;  %v331_v16 = vld [vmem:[%s2092_s6 + $0x528] sm:$0xff] }
  0x89   : > { %1332 = vst [vmem:[%s2115_s21 + $0x460] sm:$0xff] %v820_v30  ;;  %1333 = vst [vmem:[%s2115_s21 + $0x468] sm:$0xff] %v821_v34  ;;  %v844_v15 = vmul.f32 %v2099_v1, %v330_v12  ;;  %v332_v17 = vld [vmem:[%s2092_s6 + $0x530] sm:$0xff]  ;;  %v333_v18 = vld [vmem:[%s2092_s6 + $0x538] sm:$0xff]  ;;  %v845_v19 = vmul.f32 %v2099_v1, %v331_v16 }
  0x8a   : > { %1334 = vst [vmem:[%s2115_s21 + $0x470] sm:$0xff] %v822_v35  ;;  %1335 = vst [vmem:[%s2115_s21 + $0x478] sm:$0xff] %v823_v36  ;;  %v846_v20 = vmul.f32 %v2099_v1, %v332_v17  ;;  %v847_v21 = vmul.f32 %v2099_v1, %v333_v18  ;;  %v334_v22 = vld [vmem:[%s2092_s6 + $0x540] sm:$0xff]  ;;  %v335_v23 = vld [vmem:[%s2092_s6 + $0x548] sm:$0xff] }
  0x8b   : > { %1336 = vst [vmem:[%s2115_s21 + $0x480] sm:$0xff] %v824_v40  ;;  %1337 = vst [vmem:[%s2115_s21 + $0x488] sm:$0xff] %v825_v41  ;;  %v336_v24 = vld [vmem:[%s2092_s6 + $0x550] sm:$0xff]  ;;  %v848_v25 = vmul.f32 %v2099_v1, %v334_v22  ;;  %v849_v26 = vmul.f32 %v2099_v1, %v335_v23  ;;  %v337_v28 = vld [vmem:[%s2092_s6 + $0x558] sm:$0xff] }
  0x8c   : > { %1338 = vst [vmem:[%s2115_s21 + $0x490] sm:$0xff] %v826_v42  ;;  %1339 = vst [vmem:[%s2115_s21 + $0x498] sm:$0xff] %v827_v46  ;;  %v850_v27 = vmul.f32 %v2099_v1, %v336_v24  ;;  %v338_v29 = vld [vmem:[%s2092_s6 + $0x560] sm:$0xff]  ;;  %v339_v30 = vld [vmem:[%s2092_s6 + $0x568] sm:$0xff]  ;;  %v851_v31 = vmul.f32 %v2099_v1, %v337_v28 }
  0x8d   : > { %1340 = vst [vmem:[%s2115_s21 + $0x4a0] sm:$0xff] %v828_v47  ;;  %1341 = vst [vmem:[%s2115_s21 + $0x4a8] sm:$0xff] %v829_v48  ;;  %v852_v32 = vmul.f32 %v2099_v1, %v338_v29  ;;  %v853_v33 = vmul.f32 %v2099_v1, %v339_v30  ;;  %v340_v34 = vld [vmem:[%s2092_s6 + $0x570] sm:$0xff]  ;;  %v341_v35 = vld [vmem:[%s2092_s6 + $0x578] sm:$0xff] }
  0x8e   : > { %1342 = vst [vmem:[%s2115_s21 + $0x4b0] sm:$0xff] %v830_v52  ;;  %1343 = vst [vmem:[%s2115_s21 + $0x4b8] sm:$0xff] %v831_v53  ;;  %v342_v36 = vld [vmem:[%s2092_s6 + $0x580] sm:$0xff]  ;;  %v854_v37 = vmul.f32 %v2099_v1, %v340_v34  ;;  %v855_v38 = vmul.f32 %v2099_v1, %v341_v35  ;;  %v343_v40 = vld [vmem:[%s2092_s6 + $0x588] sm:$0xff] }
  0x8f   : > { %1344 = vst [vmem:[%s2115_s21 + $0x4c0] sm:$0xff] %v832_v54  ;;  %1345 = vst [vmem:[%s2115_s21 + $0x4c8] sm:$0xff] %v833_v58  ;;  %v856_v39 = vmul.f32 %v2099_v1, %v342_v36  ;;  %v344_v41 = vld [vmem:[%s2092_s6 + $0x590] sm:$0xff]  ;;  %v345_v42 = vld [vmem:[%s2092_s6 + $0x598] sm:$0xff]  ;;  %v857_v43 = vmul.f32 %v2099_v1, %v343_v40 }
  0x90   : > { %1346 = vst [vmem:[%s2115_s21 + $0x4d0] sm:$0xff] %v834_v59  ;;  %1347 = vst [vmem:[%s2115_s21 + $0x4d8] sm:$0xff] %v835_v60  ;;  %v858_v44 = vmul.f32 %v2099_v1, %v344_v41  ;;  %v859_v45 = vmul.f32 %v2099_v1, %v345_v42  ;;  %v346_v46 = vld [vmem:[%s2092_s6 + $0x5a0] sm:$0xff]  ;;  %v347_v47 = vld [vmem:[%s2092_s6 + $0x5a8] sm:$0xff] }
  0x91   : > { %1348 = vst [vmem:[%s2115_s21 + $0x4e0] sm:$0xff] %v836_v0  ;;  %1349 = vst [vmem:[%s2115_s21 + $0x4e8] sm:$0xff] %v837_v2  ;;  %v348_v48 = vld [vmem:[%s2092_s6 + $0x5b0] sm:$0xff]  ;;  %v860_v49 = vmul.f32 %v2099_v1, %v346_v46  ;;  %v861_v50 = vmul.f32 %v2099_v1, %v347_v47  ;;  %v349_v52 = vld [vmem:[%s2092_s6 + $0x5b8] sm:$0xff] }
  0x92   : > { %1350 = vst [vmem:[%s2115_s21 + $0x4f0] sm:$0xff] %v838_v3  ;;  %1351 = vst [vmem:[%s2115_s21 + $0x4f8] sm:$0xff] %v839_v7  ;;  %v862_v51 = vmul.f32 %v2099_v1, %v348_v48  ;;  %v350_v53 = vld [vmem:[%s2092_s6 + $0x5c0] sm:$0xff]  ;;  %v351_v54 = vld [vmem:[%s2092_s6 + $0x5c8] sm:$0xff]  ;;  %v863_v55 = vmul.f32 %v2099_v1, %v349_v52 }
  0x93   : > { %1352 = vst [vmem:[%s2115_s21 + $0x500] sm:$0xff] %v840_v8  ;;  %1353 = vst [vmem:[%s2115_s21 + $0x508] sm:$0xff] %v841_v9  ;;  %v864_v56 = vmul.f32 %v2099_v1, %v350_v53  ;;  %v865_v57 = vmul.f32 %v2099_v1, %v351_v54  ;;  %v352_v58 = vld [vmem:[%s2092_s6 + $0x5d0] sm:$0xff]  ;;  %v353_v59 = vld [vmem:[%s2092_s6 + $0x5d8] sm:$0xff] }
  0x94   : > { %1354 = vst [vmem:[%s2115_s21 + $0x510] sm:$0xff] %v842_v13  ;;  %1355 = vst [vmem:[%s2115_s21 + $0x518] sm:$0xff] %v843_v14  ;;  %v354_v60 = vld [vmem:[%s2092_s6 + $0x5e0] sm:$0xff]  ;;  %v866_v61 = vmul.f32 %v2099_v1, %v352_v58  ;;  %v867_v62 = vmul.f32 %v2099_v1, %v353_v59  ;;  %v355_v0 = vld [vmem:[%s2092_s6 + $0x5e8] sm:$0xff] }
  0x95   : > { %1356 = vst [vmem:[%s2115_s21 + $0x520] sm:$0xff] %v844_v15  ;;  %1357 = vst [vmem:[%s2115_s21 + $0x528] sm:$0xff] %v845_v19  ;;  %v868_v63 = vmul.f32 %v2099_v1, %v354_v60  ;;  %v356_v2 = vld [vmem:[%s2092_s6 + $0x5f0] sm:$0xff]  ;;  %v357_v3 = vld [vmem:[%s2092_s6 + $0x5f8] sm:$0xff]  ;;  %v869_v4 = vmul.f32 %v2099_v1, %v355_v0 }
  0x96   : > { %1358 = vst [vmem:[%s2115_s21 + $0x530] sm:$0xff] %v846_v20  ;;  %1359 = vst [vmem:[%s2115_s21 + $0x538] sm:$0xff] %v847_v21  ;;  %v870_v5 = vmul.f32 %v2099_v1, %v356_v2  ;;  %v871_v6 = vmul.f32 %v2099_v1, %v357_v3  ;;  %v358_v7 = vld [vmem:[%s2092_s6 + $0x600] sm:$0xff]  ;;  %v359_v8 = vld [vmem:[%s2092_s6 + $0x608] sm:$0xff] }
  0x97   : > { %1360 = vst [vmem:[%s2115_s21 + $0x540] sm:$0xff] %v848_v25  ;;  %1361 = vst [vmem:[%s2115_s21 + $0x548] sm:$0xff] %v849_v26  ;;  %v360_v9 = vld [vmem:[%s2092_s6 + $0x610] sm:$0xff]  ;;  %v872_v10 = vmul.f32 %v2099_v1, %v358_v7  ;;  %v873_v11 = vmul.f32 %v2099_v1, %v359_v8  ;;  %v361_v13 = vld [vmem:[%s2092_s6 + $0x618] sm:$0xff] }
  0x98   : > { %1362 = vst [vmem:[%s2115_s21 + $0x550] sm:$0xff] %v850_v27  ;;  %1363 = vst [vmem:[%s2115_s21 + $0x558] sm:$0xff] %v851_v31  ;;  %v874_v12 = vmul.f32 %v2099_v1, %v360_v9  ;;  %v362_v14 = vld [vmem:[%s2092_s6 + $0x620] sm:$0xff]  ;;  %v363_v15 = vld [vmem:[%s2092_s6 + $0x628] sm:$0xff]  ;;  %v875_v16 = vmul.f32 %v2099_v1, %v361_v13 }
  0x99   : > { %1364 = vst [vmem:[%s2115_s21 + $0x560] sm:$0xff] %v852_v32  ;;  %1365 = vst [vmem:[%s2115_s21 + $0x568] sm:$0xff] %v853_v33  ;;  %v876_v17 = vmul.f32 %v2099_v1, %v362_v14  ;;  %v877_v18 = vmul.f32 %v2099_v1, %v363_v15  ;;  %v364_v19 = vld [vmem:[%s2092_s6 + $0x630] sm:$0xff]  ;;  %v365_v20 = vld [vmem:[%s2092_s6 + $0x638] sm:$0xff] }
  0x9a   : > { %1366 = vst [vmem:[%s2115_s21 + $0x570] sm:$0xff] %v854_v37  ;;  %1367 = vst [vmem:[%s2115_s21 + $0x578] sm:$0xff] %v855_v38  ;;  %v366_v21 = vld [vmem:[%s2092_s6 + $0x640] sm:$0xff]  ;;  %v878_v22 = vmul.f32 %v2099_v1, %v364_v19  ;;  %v879_v23 = vmul.f32 %v2099_v1, %v365_v20  ;;  %v367_v25 = vld [vmem:[%s2092_s6 + $0x648] sm:$0xff] }
  0x9b   : > { %1368 = vst [vmem:[%s2115_s21 + $0x580] sm:$0xff] %v856_v39  ;;  %1369 = vst [vmem:[%s2115_s21 + $0x588] sm:$0xff] %v857_v43  ;;  %v880_v24 = vmul.f32 %v2099_v1, %v366_v21  ;;  %v368_v26 = vld [vmem:[%s2092_s6 + $0x650] sm:$0xff]  ;;  %v369_v27 = vld [vmem:[%s2092_s6 + $0x658] sm:$0xff]  ;;  %v881_v28 = vmul.f32 %v2099_v1, %v367_v25 }
  0x9c   : > { %1370 = vst [vmem:[%s2115_s21 + $0x590] sm:$0xff] %v858_v44  ;;  %1371 = vst [vmem:[%s2115_s21 + $0x598] sm:$0xff] %v859_v45  ;;  %v882_v29 = vmul.f32 %v2099_v1, %v368_v26  ;;  %v883_v30 = vmul.f32 %v2099_v1, %v369_v27  ;;  %v370_v31 = vld [vmem:[%s2092_s6 + $0x660] sm:$0xff]  ;;  %v371_v32 = vld [vmem:[%s2092_s6 + $0x668] sm:$0xff] }
  0x9d   : > { %1372 = vst [vmem:[%s2115_s21 + $0x5a0] sm:$0xff] %v860_v49  ;;  %1373 = vst [vmem:[%s2115_s21 + $0x5a8] sm:$0xff] %v861_v50  ;;  %v372_v33 = vld [vmem:[%s2092_s6 + $0x670] sm:$0xff]  ;;  %v884_v34 = vmul.f32 %v2099_v1, %v370_v31  ;;  %v885_v35 = vmul.f32 %v2099_v1, %v371_v32  ;;  %v373_v37 = vld [vmem:[%s2092_s6 + $0x678] sm:$0xff] }
  0x9e   : > { %1374 = vst [vmem:[%s2115_s21 + $0x5b0] sm:$0xff] %v862_v51  ;;  %1375 = vst [vmem:[%s2115_s21 + $0x5b8] sm:$0xff] %v863_v55  ;;  %v886_v36 = vmul.f32 %v2099_v1, %v372_v33  ;;  %v374_v38 = vld [vmem:[%s2092_s6 + $0x680] sm:$0xff]  ;;  %v375_v39 = vld [vmem:[%s2092_s6 + $0x688] sm:$0xff]  ;;  %v887_v40 = vmul.f32 %v2099_v1, %v373_v37 }
  0x9f   : > { %1376 = vst [vmem:[%s2115_s21 + $0x5c0] sm:$0xff] %v864_v56  ;;  %1377 = vst [vmem:[%s2115_s21 + $0x5c8] sm:$0xff] %v865_v57  ;;  %v888_v41 = vmul.f32 %v2099_v1, %v374_v38  ;;  %v889_v42 = vmul.f32 %v2099_v1, %v375_v39  ;;  %v376_v43 = vld [vmem:[%s2092_s6 + $0x690] sm:$0xff]  ;;  %v377_v44 = vld [vmem:[%s2092_s6 + $0x698] sm:$0xff] }
  0xa0   : > { %1378 = vst [vmem:[%s2115_s21 + $0x5d0] sm:$0xff] %v866_v61  ;;  %1379 = vst [vmem:[%s2115_s21 + $0x5d8] sm:$0xff] %v867_v62  ;;  %v378_v45 = vld [vmem:[%s2092_s6 + $0x6a0] sm:$0xff]  ;;  %v890_v46 = vmul.f32 %v2099_v1, %v376_v43  ;;  %v891_v47 = vmul.f32 %v2099_v1, %v377_v44  ;;  %v379_v49 = vld [vmem:[%s2092_s6 + $0x6a8] sm:$0xff] }
  0xa1   : > { %1380 = vst [vmem:[%s2115_s21 + $0x5e0] sm:$0xff] %v868_v63  ;;  %1381 = vst [vmem:[%s2115_s21 + $0x5e8] sm:$0xff] %v869_v4  ;;  %v892_v48 = vmul.f32 %v2099_v1, %v378_v45  ;;  %v380_v50 = vld [vmem:[%s2092_s6 + $0x6b0] sm:$0xff]  ;;  %v381_v51 = vld [vmem:[%s2092_s6 + $0x6b8] sm:$0xff]  ;;  %v893_v52 = vmul.f32 %v2099_v1, %v379_v49 }
  0xa2   : > { %1382 = vst [vmem:[%s2115_s21 + $0x5f0] sm:$0xff] %v870_v5  ;;  %1383 = vst [vmem:[%s2115_s21 + $0x5f8] sm:$0xff] %v871_v6  ;;  %v894_v53 = vmul.f32 %v2099_v1, %v380_v50  ;;  %v895_v54 = vmul.f32 %v2099_v1, %v381_v51  ;;  %v382_v55 = vld [vmem:[%s2092_s6 + $0x6c0] sm:$0xff]  ;;  %v383_v56 = vld [vmem:[%s2092_s6 + $0x6c8] sm:$0xff] }
  0xa3   : > { %1384 = vst [vmem:[%s2115_s21 + $0x600] sm:$0xff] %v872_v10  ;;  %1385 = vst [vmem:[%s2115_s21 + $0x608] sm:$0xff] %v873_v11  ;;  %v384_v57 = vld [vmem:[%s2092_s6 + $0x6d0] sm:$0xff]  ;;  %v896_v58 = vmul.f32 %v2099_v1, %v382_v55  ;;  %v897_v59 = vmul.f32 %v2099_v1, %v383_v56  ;;  %v385_v61 = vld [vmem:[%s2092_s6 + $0x6d8] sm:$0xff] }
  0xa4   : > { %1386 = vst [vmem:[%s2115_s21 + $0x610] sm:$0xff] %v874_v12  ;;  %1387 = vst [vmem:[%s2115_s21 + $0x618] sm:$0xff] %v875_v16  ;;  %v898_v60 = vmul.f32 %v2099_v1, %v384_v57  ;;  %v386_v62 = vld [vmem:[%s2092_s6 + $0x6e0] sm:$0xff]  ;;  %v387_v63 = vld [vmem:[%s2092_s6 + $0x6e8] sm:$0xff]  ;;  %v899_v0 = vmul.f32 %v2099_v1, %v385_v61 }
  0xa5   : > { %1388 = vst [vmem:[%s2115_s21 + $0x620] sm:$0xff] %v876_v17  ;;  %1389 = vst [vmem:[%s2115_s21 + $0x628] sm:$0xff] %v877_v18  ;;  %v900_v2 = vmul.f32 %v2099_v1, %v386_v62  ;;  %v901_v3 = vmul.f32 %v2099_v1, %v387_v63  ;;  %v388_v4 = vld [vmem:[%s2092_s6 + $0x6f0] sm:$0xff]  ;;  %v389_v5 = vld [vmem:[%s2092_s6 + $0x6f8] sm:$0xff] }
  0xa6   : > { %1390 = vst [vmem:[%s2115_s21 + $0x630] sm:$0xff] %v878_v22  ;;  %1391 = vst [vmem:[%s2115_s21 + $0x638] sm:$0xff] %v879_v23  ;;  %v390_v6 = vld [vmem:[%s2092_s6 + $0x700] sm:$0xff]  ;;  %v902_v7 = vmul.f32 %v2099_v1, %v388_v4  ;;  %v903_v8 = vmul.f32 %v2099_v1, %v389_v5  ;;  %v391_v10 = vld [vmem:[%s2092_s6 + $0x708] sm:$0xff] }
  0xa7   : > { %1392 = vst [vmem:[%s2115_s21 + $0x640] sm:$0xff] %v880_v24  ;;  %1393 = vst [vmem:[%s2115_s21 + $0x648] sm:$0xff] %v881_v28  ;;  %v904_v9 = vmul.f32 %v2099_v1, %v390_v6  ;;  %v392_v11 = vld [vmem:[%s2092_s6 + $0x710] sm:$0xff]  ;;  %v393_v12 = vld [vmem:[%s2092_s6 + $0x718] sm:$0xff]  ;;  %v905_v13 = vmul.f32 %v2099_v1, %v391_v10 }
  0xa8   : > { %1394 = vst [vmem:[%s2115_s21 + $0x650] sm:$0xff] %v882_v29  ;;  %1395 = vst [vmem:[%s2115_s21 + $0x658] sm:$0xff] %v883_v30  ;;  %v906_v14 = vmul.f32 %v2099_v1, %v392_v11  ;;  %v907_v15 = vmul.f32 %v2099_v1, %v393_v12  ;;  %v394_v16 = vld [vmem:[%s2092_s6 + $0x720] sm:$0xff]  ;;  %v395_v17 = vld [vmem:[%s2092_s6 + $0x728] sm:$0xff] }
  0xa9   : > { %1396 = vst [vmem:[%s2115_s21 + $0x660] sm:$0xff] %v884_v34  ;;  %1397 = vst [vmem:[%s2115_s21 + $0x668] sm:$0xff] %v885_v35  ;;  %v396_v18 = vld [vmem:[%s2092_s6 + $0x730] sm:$0xff]  ;;  %v908_v19 = vmul.f32 %v2099_v1, %v394_v16  ;;  %v909_v20 = vmul.f32 %v2099_v1, %v395_v17  ;;  %v397_v22 = vld [vmem:[%s2092_s6 + $0x738] sm:$0xff] }
  0xaa   : > { %1398 = vst [vmem:[%s2115_s21 + $0x670] sm:$0xff] %v886_v36  ;;  %1399 = vst [vmem:[%s2115_s21 + $0x678] sm:$0xff] %v887_v40  ;;  %v910_v21 = vmul.f32 %v2099_v1, %v396_v18  ;;  %v398_v23 = vld [vmem:[%s2092_s6 + $0x740] sm:$0xff]  ;;  %v399_v24 = vld [vmem:[%s2092_s6 + $0x748] sm:$0xff]  ;;  %v911_v25 = vmul.f32 %v2099_v1, %v397_v22 }
  0xab   : > { %1400 = vst [vmem:[%s2115_s21 + $0x680] sm:$0xff] %v888_v41  ;;  %1401 = vst [vmem:[%s2115_s21 + $0x688] sm:$0xff] %v889_v42  ;;  %v912_v26 = vmul.f32 %v2099_v1, %v398_v23  ;;  %v913_v27 = vmul.f32 %v2099_v1, %v399_v24  ;;  %v400_v28 = vld [vmem:[%s2092_s6 + $0x750] sm:$0xff]  ;;  %v401_v29 = vld [vmem:[%s2092_s6 + $0x758] sm:$0xff] }
  0xac   : > { %1402 = vst [vmem:[%s2115_s21 + $0x690] sm:$0xff] %v890_v46  ;;  %1403 = vst [vmem:[%s2115_s21 + $0x698] sm:$0xff] %v891_v47  ;;  %v402_v30 = vld [vmem:[%s2092_s6 + $0x760] sm:$0xff]  ;;  %v914_v31 = vmul.f32 %v2099_v1, %v400_v28  ;;  %v915_v32 = vmul.f32 %v2099_v1, %v401_v29  ;;  %v403_v34 = vld [vmem:[%s2092_s6 + $0x768] sm:$0xff] }
  0xad   : > { %1404 = vst [vmem:[%s2115_s21 + $0x6a0] sm:$0xff] %v892_v48  ;;  %1405 = vst [vmem:[%s2115_s21 + $0x6a8] sm:$0xff] %v893_v52  ;;  %v916_v33 = vmul.f32 %v2099_v1, %v402_v30  ;;  %v404_v35 = vld [vmem:[%s2092_s6 + $0x770] sm:$0xff]  ;;  %v405_v36 = vld [vmem:[%s2092_s6 + $0x778] sm:$0xff]  ;;  %v917_v37 = vmul.f32 %v2099_v1, %v403_v34 }
  0xae   : > { %1406 = vst [vmem:[%s2115_s21 + $0x6b0] sm:$0xff] %v894_v53  ;;  %1407 = vst [vmem:[%s2115_s21 + $0x6b8] sm:$0xff] %v895_v54  ;;  %v918_v38 = vmul.f32 %v2099_v1, %v404_v35  ;;  %v919_v39 = vmul.f32 %v2099_v1, %v405_v36  ;;  %v406_v40 = vld [vmem:[%s2092_s6 + $0x780] sm:$0xff]  ;;  %v407_v41 = vld [vmem:[%s2092_s6 + $0x788] sm:$0xff] }
  0xaf   : > { %1408 = vst [vmem:[%s2115_s21 + $0x6c0] sm:$0xff] %v896_v58  ;;  %1409 = vst [vmem:[%s2115_s21 + $0x6c8] sm:$0xff] %v897_v59  ;;  %v408_v42 = vld [vmem:[%s2092_s6 + $0x790] sm:$0xff]  ;;  %v920_v43 = vmul.f32 %v2099_v1, %v406_v40  ;;  %v921_v44 = vmul.f32 %v2099_v1, %v407_v41  ;;  %v409_v46 = vld [vmem:[%s2092_s6 + $0x798] sm:$0xff] }
  0xb0   : > { %1410 = vst [vmem:[%s2115_s21 + $0x6d0] sm:$0xff] %v898_v60  ;;  %1411 = vst [vmem:[%s2115_s21 + $0x6d8] sm:$0xff] %v899_v0  ;;  %v922_v45 = vmul.f32 %v2099_v1, %v408_v42  ;;  %v410_v47 = vld [vmem:[%s2092_s6 + $0x7a0] sm:$0xff]  ;;  %v411_v48 = vld [vmem:[%s2092_s6 + $0x7a8] sm:$0xff]  ;;  %v923_v49 = vmul.f32 %v2099_v1, %v409_v46 }
  0xb1   : > { %1412 = vst [vmem:[%s2115_s21 + $0x6e0] sm:$0xff] %v900_v2  ;;  %1413 = vst [vmem:[%s2115_s21 + $0x6e8] sm:$0xff] %v901_v3  ;;  %v924_v50 = vmul.f32 %v2099_v1, %v410_v47  ;;  %v925_v51 = vmul.f32 %v2099_v1, %v411_v48  ;;  %v412_v52 = vld [vmem:[%s2092_s6 + $0x7b0] sm:$0xff]  ;;  %v413_v53 = vld [vmem:[%s2092_s6 + $0x7b8] sm:$0xff] }
  0xb2   : > { %1414 = vst [vmem:[%s2115_s21 + $0x6f0] sm:$0xff] %v902_v7  ;;  %1415 = vst [vmem:[%s2115_s21 + $0x6f8] sm:$0xff] %v903_v8  ;;  %v414_v54 = vld [vmem:[%s2092_s6 + $0x7c0] sm:$0xff]  ;;  %v926_v55 = vmul.f32 %v2099_v1, %v412_v52  ;;  %v927_v56 = vmul.f32 %v2099_v1, %v413_v53  ;;  %v415_v58 = vld [vmem:[%s2092_s6 + $0x7c8] sm:$0xff] }
  0xb3   : > { %1416 = vst [vmem:[%s2115_s21 + $0x700] sm:$0xff] %v904_v9  ;;  %1417 = vst [vmem:[%s2115_s21 + $0x708] sm:$0xff] %v905_v13  ;;  %v928_v57 = vmul.f32 %v2099_v1, %v414_v54  ;;  %v416_v59 = vld [vmem:[%s2092_s6 + $0x7d0] sm:$0xff]  ;;  %v417_v60 = vld [vmem:[%s2092_s6 + $0x7d8] sm:$0xff]  ;;  %v929_v61 = vmul.f32 %v2099_v1, %v415_v58 }
  0xb4   : > { %1418 = vst [vmem:[%s2115_s21 + $0x710] sm:$0xff] %v906_v14  ;;  %1419 = vst [vmem:[%s2115_s21 + $0x718] sm:$0xff] %v907_v15  ;;  %v930_v62 = vmul.f32 %v2099_v1, %v416_v59  ;;  %v931_v63 = vmul.f32 %v2099_v1, %v417_v60  ;;  %v418_v0 = vld [vmem:[%s2092_s6 + $0x7e0] sm:$0xff]  ;;  %v419_v2 = vld [vmem:[%s2092_s6 + $0x7e8] sm:$0xff] }
  0xb5   : > { %1420 = vst [vmem:[%s2115_s21 + $0x720] sm:$0xff] %v908_v19  ;;  %1421 = vst [vmem:[%s2115_s21 + $0x728] sm:$0xff] %v909_v20  ;;  %v420_v3 = vld [vmem:[%s2092_s6 + $0x7f0] sm:$0xff]  ;;  %v932_v4 = vmul.f32 %v2099_v1, %v418_v0  ;;  %v933_v5 = vmul.f32 %v2099_v1, %v419_v2  ;;  %v421_v7 = vld [vmem:[%s2092_s6 + $0x7f8] sm:$0xff] }
  0xb6   : > { %1422 = vst [vmem:[%s2115_s21 + $0x730] sm:$0xff] %v910_v21  ;;  %1423 = vst [vmem:[%s2115_s21 + $0x738] sm:$0xff] %v911_v25  ;;  %v934_v6 = vmul.f32 %v2099_v1, %v420_v3  ;;  %v422_v8 = vld [vmem:[%s2092_s6 + $0x800] sm:$0xff]  ;;  %v423_v9 = vld [vmem:[%s2092_s6 + $0x808] sm:$0xff]  ;;  %v935_v10 = vmul.f32 %v2099_v1, %v421_v7 }
  0xb7   : > { %1424 = vst [vmem:[%s2115_s21 + $0x740] sm:$0xff] %v912_v26  ;;  %1425 = vst [vmem:[%s2115_s21 + $0x748] sm:$0xff] %v913_v27  ;;  %v936_v11 = vmul.f32 %v2099_v1, %v422_v8  ;;  %v937_v12 = vmul.f32 %v2099_v1, %v423_v9  ;;  %v424_v13 = vld [vmem:[%s2092_s6 + $0x810] sm:$0xff]  ;;  %v425_v14 = vld [vmem:[%s2092_s6 + $0x818] sm:$0xff] }
  0xb8   : > { %1426 = vst [vmem:[%s2115_s21 + $0x750] sm:$0xff] %v914_v31  ;;  %1427 = vst [vmem:[%s2115_s21 + $0x758] sm:$0xff] %v915_v32  ;;  %v426_v15 = vld [vmem:[%s2092_s6 + $0x820] sm:$0xff]  ;;  %v938_v16 = vmul.f32 %v2099_v1, %v424_v13  ;;  %v939_v17 = vmul.f32 %v2099_v1, %v425_v14  ;;  %v427_v19 = vld [vmem:[%s2092_s6 + $0x828] sm:$0xff] }
  0xb9   : > { %1428 = vst [vmem:[%s2115_s21 + $0x760] sm:$0xff] %v916_v33  ;;  %1429 = vst [vmem:[%s2115_s21 + $0x768] sm:$0xff] %v917_v37  ;;  %v940_v18 = vmul.f32 %v2099_v1, %v426_v15  ;;  %v428_v20 = vld [vmem:[%s2092_s6 + $0x830] sm:$0xff]  ;;  %v429_v21 = vld [vmem:[%s2092_s6 + $0x838] sm:$0xff]  ;;  %v941_v22 = vmul.f32 %v2099_v1, %v427_v19 }
  0xba   : > { %1430 = vst [vmem:[%s2115_s21 + $0x770] sm:$0xff] %v918_v38  ;;  %1431 = vst [vmem:[%s2115_s21 + $0x778] sm:$0xff] %v919_v39  ;;  %v942_v23 = vmul.f32 %v2099_v1, %v428_v20  ;;  %v943_v24 = vmul.f32 %v2099_v1, %v429_v21  ;;  %v430_v25 = vld [vmem:[%s2092_s6 + $0x840] sm:$0xff]  ;;  %v431_v26 = vld [vmem:[%s2092_s6 + $0x848] sm:$0xff] }
  0xbb   : > { %1432 = vst [vmem:[%s2115_s21 + $0x780] sm:$0xff] %v920_v43  ;;  %1433 = vst [vmem:[%s2115_s21 + $0x788] sm:$0xff] %v921_v44  ;;  %v432_v27 = vld [vmem:[%s2092_s6 + $0x850] sm:$0xff]  ;;  %v944_v28 = vmul.f32 %v2099_v1, %v430_v25  ;;  %v945_v29 = vmul.f32 %v2099_v1, %v431_v26  ;;  %v433_v31 = vld [vmem:[%s2092_s6 + $0x858] sm:$0xff] }
  0xbc   : > { %1434 = vst [vmem:[%s2115_s21 + $0x790] sm:$0xff] %v922_v45  ;;  %1435 = vst [vmem:[%s2115_s21 + $0x798] sm:$0xff] %v923_v49  ;;  %v946_v30 = vmul.f32 %v2099_v1, %v432_v27  ;;  %v434_v32 = vld [vmem:[%s2092_s6 + $0x860] sm:$0xff]  ;;  %v435_v33 = vld [vmem:[%s2092_s6 + $0x868] sm:$0xff]  ;;  %v947_v34 = vmul.f32 %v2099_v1, %v433_v31 }
  0xbd   : > { %1436 = vst [vmem:[%s2115_s21 + $0x7a0] sm:$0xff] %v924_v50  ;;  %1437 = vst [vmem:[%s2115_s21 + $0x7a8] sm:$0xff] %v925_v51  ;;  %v948_v35 = vmul.f32 %v2099_v1, %v434_v32  ;;  %v949_v36 = vmul.f32 %v2099_v1, %v435_v33  ;;  %v436_v37 = vld [vmem:[%s2092_s6 + $0x870] sm:$0xff]  ;;  %v437_v38 = vld [vmem:[%s2092_s6 + $0x878] sm:$0xff] }
  0xbe   : > { %1438 = vst [vmem:[%s2115_s21 + $0x7b0] sm:$0xff] %v926_v55  ;;  %1439 = vst [vmem:[%s2115_s21 + $0x7b8] sm:$0xff] %v927_v56  ;;  %v438_v39 = vld [vmem:[%s2092_s6 + $0x880] sm:$0xff]  ;;  %v950_v40 = vmul.f32 %v2099_v1, %v436_v37  ;;  %v951_v41 = vmul.f32 %v2099_v1, %v437_v38  ;;  %v439_v43 = vld [vmem:[%s2092_s6 + $0x888] sm:$0xff] }
  0xbf   : > { %1440 = vst [vmem:[%s2115_s21 + $0x7c0] sm:$0xff] %v928_v57  ;;  %1441 = vst [vmem:[%s2115_s21 + $0x7c8] sm:$0xff] %v929_v61  ;;  %v952_v42 = vmul.f32 %v2099_v1, %v438_v39  ;;  %v440_v44 = vld [vmem:[%s2092_s6 + $0x890] sm:$0xff]  ;;  %v441_v45 = vld [vmem:[%s2092_s6 + $0x898] sm:$0xff]  ;;  %v953_v46 = vmul.f32 %v2099_v1, %v439_v43 }
  0xc0   : > { %1442 = vst [vmem:[%s2115_s21 + $0x7d0] sm:$0xff] %v930_v62  ;;  %1443 = vst [vmem:[%s2115_s21 + $0x7d8] sm:$0xff] %v931_v63  ;;  %v954_v47 = vmul.f32 %v2099_v1, %v440_v44  ;;  %v955_v48 = vmul.f32 %v2099_v1, %v441_v45  ;;  %v442_v49 = vld [vmem:[%s2092_s6 + $0x8a0] sm:$0xff]  ;;  %v443_v50 = vld [vmem:[%s2092_s6 + $0x8a8] sm:$0xff] }
  0xc1   : > { %1444 = vst [vmem:[%s2115_s21 + $0x7e0] sm:$0xff] %v932_v4  ;;  %1445 = vst [vmem:[%s2115_s21 + $0x7e8] sm:$0xff] %v933_v5  ;;  %v444_v51 = vld [vmem:[%s2092_s6 + $0x8b0] sm:$0xff]  ;;  %v956_v52 = vmul.f32 %v2099_v1, %v442_v49  ;;  %v957_v53 = vmul.f32 %v2099_v1, %v443_v50  ;;  %v445_v55 = vld [vmem:[%s2092_s6 + $0x8b8] sm:$0xff] }
  0xc2   : > { %1446 = vst [vmem:[%s2115_s21 + $0x7f0] sm:$0xff] %v934_v6  ;;  %1447 = vst [vmem:[%s2115_s21 + $0x7f8] sm:$0xff] %v935_v10  ;;  %v958_v54 = vmul.f32 %v2099_v1, %v444_v51  ;;  %v446_v56 = vld [vmem:[%s2092_s6 + $0x8c0] sm:$0xff]  ;;  %v447_v57 = vld [vmem:[%s2092_s6 + $0x8c8] sm:$0xff]  ;;  %v959_v58 = vmul.f32 %v2099_v1, %v445_v55 }
  0xc3   : > { %1448 = vst [vmem:[%s2115_s21 + $0x800] sm:$0xff] %v936_v11  ;;  %1449 = vst [vmem:[%s2115_s21 + $0x808] sm:$0xff] %v937_v12  ;;  %v960_v59 = vmul.f32 %v2099_v1, %v446_v56  ;;  %v961_v60 = vmul.f32 %v2099_v1, %v447_v57  ;;  %v448_v61 = vld [vmem:[%s2092_s6 + $0x8d0] sm:$0xff]  ;;  %v449_v62 = vld [vmem:[%s2092_s6 + $0x8d8] sm:$0xff] }
  0xc4   : > { %1450 = vst [vmem:[%s2115_s21 + $0x810] sm:$0xff] %v938_v16  ;;  %1451 = vst [vmem:[%s2115_s21 + $0x818] sm:$0xff] %v939_v17  ;;  %v450_v63 = vld [vmem:[%s2092_s6 + $0x8e0] sm:$0xff]  ;;  %v962_v0 = vmul.f32 %v2099_v1, %v448_v61  ;;  %v963_v2 = vmul.f32 %v2099_v1, %v449_v62  ;;  %v451_v4 = vld [vmem:[%s2092_s6 + $0x8e8] sm:$0xff] }
  0xc5   : > { %1452 = vst [vmem:[%s2115_s21 + $0x820] sm:$0xff] %v940_v18  ;;  %1453 = vst [vmem:[%s2115_s21 + $0x828] sm:$0xff] %v941_v22  ;;  %v964_v3 = vmul.f32 %v2099_v1, %v450_v63  ;;  %v452_v5 = vld [vmem:[%s2092_s6 + $0x8f0] sm:$0xff]  ;;  %v453_v6 = vld [vmem:[%s2092_s6 + $0x8f8] sm:$0xff]  ;;  %v965_v7 = vmul.f32 %v2099_v1, %v451_v4 }
  0xc6   : > { %1454 = vst [vmem:[%s2115_s21 + $0x830] sm:$0xff] %v942_v23  ;;  %1455 = vst [vmem:[%s2115_s21 + $0x838] sm:$0xff] %v943_v24  ;;  %v966_v8 = vmul.f32 %v2099_v1, %v452_v5  ;;  %v967_v9 = vmul.f32 %v2099_v1, %v453_v6  ;;  %v454_v10 = vld [vmem:[%s2092_s6 + $0x900] sm:$0xff]  ;;  %v455_v11 = vld [vmem:[%s2092_s6 + $0x908] sm:$0xff] }
  0xc7   : > { %1456 = vst [vmem:[%s2115_s21 + $0x840] sm:$0xff] %v944_v28  ;;  %1457 = vst [vmem:[%s2115_s21 + $0x848] sm:$0xff] %v945_v29  ;;  %v456_v12 = vld [vmem:[%s2092_s6 + $0x910] sm:$0xff]  ;;  %v968_v13 = vmul.f32 %v2099_v1, %v454_v10  ;;  %v969_v14 = vmul.f32 %v2099_v1, %v455_v11  ;;  %v457_v16 = vld [vmem:[%s2092_s6 + $0x918] sm:$0xff] }
  0xc8   : > { %1458 = vst [vmem:[%s2115_s21 + $0x850] sm:$0xff] %v946_v30  ;;  %1459 = vst [vmem:[%s2115_s21 + $0x858] sm:$0xff] %v947_v34  ;;  %v970_v15 = vmul.f32 %v2099_v1, %v456_v12  ;;  %v458_v17 = vld [vmem:[%s2092_s6 + $0x920] sm:$0xff]  ;;  %v459_v18 = vld [vmem:[%s2092_s6 + $0x928] sm:$0xff]  ;;  %v971_v19 = vmul.f32 %v2099_v1, %v457_v16 }
  0xc9   : > { %1460 = vst [vmem:[%s2115_s21 + $0x860] sm:$0xff] %v948_v35  ;;  %1461 = vst [vmem:[%s2115_s21 + $0x868] sm:$0xff] %v949_v36  ;;  %v972_v20 = vmul.f32 %v2099_v1, %v458_v17  ;;  %v973_v21 = vmul.f32 %v2099_v1, %v459_v18  ;;  %v460_v22 = vld [vmem:[%s2092_s6 + $0x930] sm:$0xff]  ;;  %v461_v23 = vld [vmem:[%s2092_s6 + $0x938] sm:$0xff] }
  0xca   : > { %1462 = vst [vmem:[%s2115_s21 + $0x870] sm:$0xff] %v950_v40  ;;  %1463 = vst [vmem:[%s2115_s21 + $0x878] sm:$0xff] %v951_v41  ;;  %v462_v24 = vld [vmem:[%s2092_s6 + $0x940] sm:$0xff]  ;;  %v974_v25 = vmul.f32 %v2099_v1, %v460_v22  ;;  %v975_v26 = vmul.f32 %v2099_v1, %v461_v23  ;;  %v463_v28 = vld [vmem:[%s2092_s6 + $0x948] sm:$0xff] }
  0xcb   : > { %1464 = vst [vmem:[%s2115_s21 + $0x880] sm:$0xff] %v952_v42  ;;  %1465 = vst [vmem:[%s2115_s21 + $0x888] sm:$0xff] %v953_v46  ;;  %v976_v27 = vmul.f32 %v2099_v1, %v462_v24  ;;  %v464_v29 = vld [vmem:[%s2092_s6 + $0x950] sm:$0xff]  ;;  %v465_v30 = vld [vmem:[%s2092_s6 + $0x958] sm:$0xff]  ;;  %v977_v31 = vmul.f32 %v2099_v1, %v463_v28 }
  0xcc   : > { %1466 = vst [vmem:[%s2115_s21 + $0x890] sm:$0xff] %v954_v47  ;;  %1467 = vst [vmem:[%s2115_s21 + $0x898] sm:$0xff] %v955_v48  ;;  %v978_v32 = vmul.f32 %v2099_v1, %v464_v29  ;;  %v979_v33 = vmul.f32 %v2099_v1, %v465_v30  ;;  %v466_v34 = vld [vmem:[%s2092_s6 + $0x960] sm:$0xff]  ;;  %v467_v35 = vld [vmem:[%s2092_s6 + $0x968] sm:$0xff] }
  0xcd   : > { %1468 = vst [vmem:[%s2115_s21 + $0x8a0] sm:$0xff] %v956_v52  ;;  %1469 = vst [vmem:[%s2115_s21 + $0x8a8] sm:$0xff] %v957_v53  ;;  %v468_v36 = vld [vmem:[%s2092_s6 + $0x970] sm:$0xff]  ;;  %v980_v37 = vmul.f32 %v2099_v1, %v466_v34  ;;  %v981_v38 = vmul.f32 %v2099_v1, %v467_v35  ;;  %v469_v40 = vld [vmem:[%s2092_s6 + $0x978] sm:$0xff] }
  0xce   : > { %1470 = vst [vmem:[%s2115_s21 + $0x8b0] sm:$0xff] %v958_v54  ;;  %1471 = vst [vmem:[%s2115_s21 + $0x8b8] sm:$0xff] %v959_v58  ;;  %v982_v39 = vmul.f32 %v2099_v1, %v468_v36  ;;  %v470_v41 = vld [vmem:[%s2092_s6 + $0x980] sm:$0xff]  ;;  %v471_v42 = vld [vmem:[%s2092_s6 + $0x988] sm:$0xff]  ;;  %v983_v43 = vmul.f32 %v2099_v1, %v469_v40 }
  0xcf   : > { %1472 = vst [vmem:[%s2115_s21 + $0x8c0] sm:$0xff] %v960_v59  ;;  %1473 = vst [vmem:[%s2115_s21 + $0x8c8] sm:$0xff] %v961_v60  ;;  %v984_v44 = vmul.f32 %v2099_v1, %v470_v41  ;;  %v985_v45 = vmul.f32 %v2099_v1, %v471_v42  ;;  %v472_v46 = vld [vmem:[%s2092_s6 + $0x990] sm:$0xff]  ;;  %v473_v47 = vld [vmem:[%s2092_s6 + $0x998] sm:$0xff] }
  0xd0   : > { %1474 = vst [vmem:[%s2115_s21 + $0x8d0] sm:$0xff] %v962_v0  ;;  %1475 = vst [vmem:[%s2115_s21 + $0x8d8] sm:$0xff] %v963_v2  ;;  %v474_v48 = vld [vmem:[%s2092_s6 + $0x9a0] sm:$0xff]  ;;  %v986_v49 = vmul.f32 %v2099_v1, %v472_v46  ;;  %v987_v50 = vmul.f32 %v2099_v1, %v473_v47  ;;  %v475_v52 = vld [vmem:[%s2092_s6 + $0x9a8] sm:$0xff] }
  0xd1   : > { %1476 = vst [vmem:[%s2115_s21 + $0x8e0] sm:$0xff] %v964_v3  ;;  %1477 = vst [vmem:[%s2115_s21 + $0x8e8] sm:$0xff] %v965_v7  ;;  %v988_v51 = vmul.f32 %v2099_v1, %v474_v48  ;;  %v476_v53 = vld [vmem:[%s2092_s6 + $0x9b0] sm:$0xff]  ;;  %v477_v54 = vld [vmem:[%s2092_s6 + $0x9b8] sm:$0xff]  ;;  %v989_v55 = vmul.f32 %v2099_v1, %v475_v52 }
  0xd2   : > { %1478 = vst [vmem:[%s2115_s21 + $0x8f0] sm:$0xff] %v966_v8  ;;  %1479 = vst [vmem:[%s2115_s21 + $0x8f8] sm:$0xff] %v967_v9  ;;  %v990_v56 = vmul.f32 %v2099_v1, %v476_v53  ;;  %v991_v57 = vmul.f32 %v2099_v1, %v477_v54  ;;  %v478_v58 = vld [vmem:[%s2092_s6 + $0x9c0] sm:$0xff]  ;;  %v479_v59 = vld [vmem:[%s2092_s6 + $0x9c8] sm:$0xff] }
  0xd3   : > { %1480 = vst [vmem:[%s2115_s21 + $0x900] sm:$0xff] %v968_v13  ;;  %1481 = vst [vmem:[%s2115_s21 + $0x908] sm:$0xff] %v969_v14  ;;  %v480_v60 = vld [vmem:[%s2092_s6 + $0x9d0] sm:$0xff]  ;;  %v992_v61 = vmul.f32 %v2099_v1, %v478_v58  ;;  %v993_v62 = vmul.f32 %v2099_v1, %v479_v59  ;;  %v481_v0 = vld [vmem:[%s2092_s6 + $0x9d8] sm:$0xff] }
  0xd4   : > { %1482 = vst [vmem:[%s2115_s21 + $0x910] sm:$0xff] %v970_v15  ;;  %1483 = vst [vmem:[%s2115_s21 + $0x918] sm:$0xff] %v971_v19  ;;  %v994_v63 = vmul.f32 %v2099_v1, %v480_v60  ;;  %v482_v2 = vld [vmem:[%s2092_s6 + $0x9e0] sm:$0xff]  ;;  %v483_v3 = vld [vmem:[%s2092_s6 + $0x9e8] sm:$0xff]  ;;  %v995_v4 = vmul.f32 %v2099_v1, %v481_v0 }
  0xd5   : > { %1484 = vst [vmem:[%s2115_s21 + $0x920] sm:$0xff] %v972_v20  ;;  %1485 = vst [vmem:[%s2115_s21 + $0x928] sm:$0xff] %v973_v21  ;;  %v996_v5 = vmul.f32 %v2099_v1, %v482_v2  ;;  %v997_v6 = vmul.f32 %v2099_v1, %v483_v3  ;;  %v484_v7 = vld [vmem:[%s2092_s6 + $0x9f0] sm:$0xff]  ;;  %v485_v8 = vld [vmem:[%s2092_s6 + $0x9f8] sm:$0xff] }
  0xd6   : > { %1486 = vst [vmem:[%s2115_s21 + $0x930] sm:$0xff] %v974_v25  ;;  %1487 = vst [vmem:[%s2115_s21 + $0x938] sm:$0xff] %v975_v26  ;;  %v486_v9 = vld [vmem:[%s2092_s6 + $0xa00] sm:$0xff]  ;;  %v998_v10 = vmul.f32 %v2099_v1, %v484_v7  ;;  %v999_v11 = vmul.f32 %v2099_v1, %v485_v8  ;;  %v487_v13 = vld [vmem:[%s2092_s6 + $0xa08] sm:$0xff] }
  0xd7   : > { %1488 = vst [vmem:[%s2115_s21 + $0x940] sm:$0xff] %v976_v27  ;;  %1489 = vst [vmem:[%s2115_s21 + $0x948] sm:$0xff] %v977_v31  ;;  %v1000_v12 = vmul.f32 %v2099_v1, %v486_v9  ;;  %v488_v14 = vld [vmem:[%s2092_s6 + $0xa10] sm:$0xff]  ;;  %v489_v15 = vld [vmem:[%s2092_s6 + $0xa18] sm:$0xff]  ;;  %v1001_v16 = vmul.f32 %v2099_v1, %v487_v13 }
  0xd8   : > { %1490 = vst [vmem:[%s2115_s21 + $0x950] sm:$0xff] %v978_v32  ;;  %1491 = vst [vmem:[%s2115_s21 + $0x958] sm:$0xff] %v979_v33  ;;  %v1002_v17 = vmul.f32 %v2099_v1, %v488_v14  ;;  %v1003_v18 = vmul.f32 %v2099_v1, %v489_v15  ;;  %v490_v19 = vld [vmem:[%s2092_s6 + $0xa20] sm:$0xff]  ;;  %v491_v20 = vld [vmem:[%s2092_s6 + $0xa28] sm:$0xff] }
  0xd9   : > { %1492 = vst [vmem:[%s2115_s21 + $0x960] sm:$0xff] %v980_v37  ;;  %1493 = vst [vmem:[%s2115_s21 + $0x968] sm:$0xff] %v981_v38  ;;  %v492_v21 = vld [vmem:[%s2092_s6 + $0xa30] sm:$0xff]  ;;  %v1004_v22 = vmul.f32 %v2099_v1, %v490_v19  ;;  %v1005_v23 = vmul.f32 %v2099_v1, %v491_v20  ;;  %v493_v25 = vld [vmem:[%s2092_s6 + $0xa38] sm:$0xff] }
  0xda   : > { %1494 = vst [vmem:[%s2115_s21 + $0x970] sm:$0xff] %v982_v39  ;;  %1495 = vst [vmem:[%s2115_s21 + $0x978] sm:$0xff] %v983_v43  ;;  %v1006_v24 = vmul.f32 %v2099_v1, %v492_v21  ;;  %v494_v26 = vld [vmem:[%s2092_s6 + $0xa40] sm:$0xff]  ;;  %v495_v27 = vld [vmem:[%s2092_s6 + $0xa48] sm:$0xff]  ;;  %v1007_v28 = vmul.f32 %v2099_v1, %v493_v25 }
  0xdb   : > { %1496 = vst [vmem:[%s2115_s21 + $0x980] sm:$0xff] %v984_v44  ;;  %1497 = vst [vmem:[%s2115_s21 + $0x988] sm:$0xff] %v985_v45  ;;  %v1008_v29 = vmul.f32 %v2099_v1, %v494_v26  ;;  %v1009_v30 = vmul.f32 %v2099_v1, %v495_v27  ;;  %v496_v31 = vld [vmem:[%s2092_s6 + $0xa50] sm:$0xff]  ;;  %v497_v32 = vld [vmem:[%s2092_s6 + $0xa58] sm:$0xff] }
  0xdc   : > { %1498 = vst [vmem:[%s2115_s21 + $0x990] sm:$0xff] %v986_v49  ;;  %1499 = vst [vmem:[%s2115_s21 + $0x998] sm:$0xff] %v987_v50  ;;  %v498_v33 = vld [vmem:[%s2092_s6 + $0xa60] sm:$0xff]  ;;  %v1010_v34 = vmul.f32 %v2099_v1, %v496_v31  ;;  %v1011_v35 = vmul.f32 %v2099_v1, %v497_v32  ;;  %v499_v37 = vld [vmem:[%s2092_s6 + $0xa68] sm:$0xff] }
  0xdd   : > { %1500 = vst [vmem:[%s2115_s21 + $0x9a0] sm:$0xff] %v988_v51  ;;  %1501 = vst [vmem:[%s2115_s21 + $0x9a8] sm:$0xff] %v989_v55  ;;  %v1012_v36 = vmul.f32 %v2099_v1, %v498_v33  ;;  %v500_v38 = vld [vmem:[%s2092_s6 + $0xa70] sm:$0xff]  ;;  %v501_v39 = vld [vmem:[%s2092_s6 + $0xa78] sm:$0xff]  ;;  %v1013_v40 = vmul.f32 %v2099_v1, %v499_v37 }
  0xde   : > { %1502 = vst [vmem:[%s2115_s21 + $0x9b0] sm:$0xff] %v990_v56  ;;  %1503 = vst [vmem:[%s2115_s21 + $0x9b8] sm:$0xff] %v991_v57  ;;  %v1014_v41 = vmul.f32 %v2099_v1, %v500_v38  ;;  %v1015_v42 = vmul.f32 %v2099_v1, %v501_v39  ;;  %v502_v43 = vld [vmem:[%s2092_s6 + $0xa80] sm:$0xff]  ;;  %v503_v44 = vld [vmem:[%s2092_s6 + $0xa88] sm:$0xff] }
  0xdf   : > { %1504 = vst [vmem:[%s2115_s21 + $0x9c0] sm:$0xff] %v992_v61  ;;  %1505 = vst [vmem:[%s2115_s21 + $0x9c8] sm:$0xff] %v993_v62  ;;  %v504_v45 = vld [vmem:[%s2092_s6 + $0xa90] sm:$0xff]  ;;  %v1016_v46 = vmul.f32 %v2099_v1, %v502_v43  ;;  %v1017_v47 = vmul.f32 %v2099_v1, %v503_v44  ;;  %v505_v49 = vld [vmem:[%s2092_s6 + $0xa98] sm:$0xff] }
  0xe0   : > { %1506 = vst [vmem:[%s2115_s21 + $0x9d0] sm:$0xff] %v994_v63  ;;  %1507 = vst [vmem:[%s2115_s21 + $0x9d8] sm:$0xff] %v995_v4  ;;  %v1018_v48 = vmul.f32 %v2099_v1, %v504_v45  ;;  %v506_v50 = vld [vmem:[%s2092_s6 + $0xaa0] sm:$0xff]  ;;  %v507_v51 = vld [vmem:[%s2092_s6 + $0xaa8] sm:$0xff]  ;;  %v1019_v52 = vmul.f32 %v2099_v1, %v505_v49 }
  0xe1   : > { %1508 = vst [vmem:[%s2115_s21 + $0x9e0] sm:$0xff] %v996_v5  ;;  %1509 = vst [vmem:[%s2115_s21 + $0x9e8] sm:$0xff] %v997_v6  ;;  %v1020_v53 = vmul.f32 %v2099_v1, %v506_v50  ;;  %v1021_v54 = vmul.f32 %v2099_v1, %v507_v51  ;;  %v508_v55 = vld [vmem:[%s2092_s6 + $0xab0] sm:$0xff]  ;;  %v509_v56 = vld [vmem:[%s2092_s6 + $0xab8] sm:$0xff] }
  0xe2   : > { %1510 = vst [vmem:[%s2115_s21 + $0x9f0] sm:$0xff] %v998_v10  ;;  %1511 = vst [vmem:[%s2115_s21 + $0x9f8] sm:$0xff] %v999_v11  ;;  %v510_v57 = vld [vmem:[%s2092_s6 + $0xac0] sm:$0xff]  ;;  %v1022_v58 = vmul.f32 %v2099_v1, %v508_v55  ;;  %v1023_v59 = vmul.f32 %v2099_v1, %v509_v56  ;;  %v511_v61 = vld [vmem:[%s2092_s6 + $0xac8] sm:$0xff] }
  0xe3   : > { %1512 = vst [vmem:[%s2115_s21 + $0xa00] sm:$0xff] %v1000_v12  ;;  %1513 = vst [vmem:[%s2115_s21 + $0xa08] sm:$0xff] %v1001_v16  ;;  %v1024_v60 = vmul.f32 %v2099_v1, %v510_v57  ;;  %v512_v62 = vld [vmem:[%s2092_s6 + $0xad0] sm:$0xff]  ;;  %v513_v63 = vld [vmem:[%s2092_s6 + $0xad8] sm:$0xff]  ;;  %v1025_v0 = vmul.f32 %v2099_v1, %v511_v61 }
  0xe4   : > { %1514 = vst [vmem:[%s2115_s21 + $0xa10] sm:$0xff] %v1002_v17  ;;  %1515 = vst [vmem:[%s2115_s21 + $0xa18] sm:$0xff] %v1003_v18  ;;  %v1026_v2 = vmul.f32 %v2099_v1, %v512_v62  ;;  %v1027_v3 = vmul.f32 %v2099_v1, %v513_v63  ;;  %v514_v4 = vld [vmem:[%s2092_s6 + $0xae0] sm:$0xff]  ;;  %v515_v5 = vld [vmem:[%s2092_s6 + $0xae8] sm:$0xff] }
  0xe5   : > { %1516 = vst [vmem:[%s2115_s21 + $0xa20] sm:$0xff] %v1004_v22  ;;  %1517 = vst [vmem:[%s2115_s21 + $0xa28] sm:$0xff] %v1005_v23  ;;  %v516_v6 = vld [vmem:[%s2092_s6 + $0xaf0] sm:$0xff]  ;;  %v1028_v7 = vmul.f32 %v2099_v1, %v514_v4  ;;  %v1029_v8 = vmul.f32 %v2099_v1, %v515_v5  ;;  %v517_v10 = vld [vmem:[%s2092_s6 + $0xaf8] sm:$0xff] }
  0xe6   : > { %1518 = vst [vmem:[%s2115_s21 + $0xa30] sm:$0xff] %v1006_v24  ;;  %1519 = vst [vmem:[%s2115_s21 + $0xa38] sm:$0xff] %v1007_v28  ;;  %v1030_v9 = vmul.f32 %v2099_v1, %v516_v6  ;;  %v518_v11 = vld [vmem:[%s2092_s6 + $0xb00] sm:$0xff]  ;;  %v519_v12 = vld [vmem:[%s2092_s6 + $0xb08] sm:$0xff]  ;;  %v1031_v13 = vmul.f32 %v2099_v1, %v517_v10 }
  0xe7   : > { %1520 = vst [vmem:[%s2115_s21 + $0xa40] sm:$0xff] %v1008_v29  ;;  %1521 = vst [vmem:[%s2115_s21 + $0xa48] sm:$0xff] %v1009_v30  ;;  %v1032_v14 = vmul.f32 %v2099_v1, %v518_v11  ;;  %v1033_v15 = vmul.f32 %v2099_v1, %v519_v12  ;;  %v520_v16 = vld [vmem:[%s2092_s6 + $0xb10] sm:$0xff]  ;;  %v521_v17 = vld [vmem:[%s2092_s6 + $0xb18] sm:$0xff] }
  0xe8   : > { %1522 = vst [vmem:[%s2115_s21 + $0xa50] sm:$0xff] %v1010_v34  ;;  %1523 = vst [vmem:[%s2115_s21 + $0xa58] sm:$0xff] %v1011_v35  ;;  %v522_v18 = vld [vmem:[%s2092_s6 + $0xb20] sm:$0xff]  ;;  %v1034_v19 = vmul.f32 %v2099_v1, %v520_v16  ;;  %v1035_v20 = vmul.f32 %v2099_v1, %v521_v17  ;;  %v523_v22 = vld [vmem:[%s2092_s6 + $0xb28] sm:$0xff] }
  0xe9   : > { %1524 = vst [vmem:[%s2115_s21 + $0xa60] sm:$0xff] %v1012_v36  ;;  %1525 = vst [vmem:[%s2115_s21 + $0xa68] sm:$0xff] %v1013_v40  ;;  %v1036_v21 = vmul.f32 %v2099_v1, %v522_v18  ;;  %v524_v23 = vld [vmem:[%s2092_s6 + $0xb30] sm:$0xff]  ;;  %v525_v24 = vld [vmem:[%s2092_s6 + $0xb38] sm:$0xff]  ;;  %v1037_v25 = vmul.f32 %v2099_v1, %v523_v22 }
  0xea   : > { %1526 = vst [vmem:[%s2115_s21 + $0xa70] sm:$0xff] %v1014_v41  ;;  %1527 = vst [vmem:[%s2115_s21 + $0xa78] sm:$0xff] %v1015_v42  ;;  %v1038_v26 = vmul.f32 %v2099_v1, %v524_v23  ;;  %v1039_v27 = vmul.f32 %v2099_v1, %v525_v24  ;;  %v526_v28 = vld [vmem:[%s2092_s6 + $0xb40] sm:$0xff]  ;;  %v527_v29 = vld [vmem:[%s2092_s6 + $0xb48] sm:$0xff] }
  0xeb   : > { %1528 = vst [vmem:[%s2115_s21 + $0xa80] sm:$0xff] %v1016_v46  ;;  %1529 = vst [vmem:[%s2115_s21 + $0xa88] sm:$0xff] %v1017_v47  ;;  %v528_v30 = vld [vmem:[%s2092_s6 + $0xb50] sm:$0xff]  ;;  %v1040_v31 = vmul.f32 %v2099_v1, %v526_v28  ;;  %v1041_v32 = vmul.f32 %v2099_v1, %v527_v29  ;;  %v529_v34 = vld [vmem:[%s2092_s6 + $0xb58] sm:$0xff] }
  0xec   : > { %1530 = vst [vmem:[%s2115_s21 + $0xa90] sm:$0xff] %v1018_v48  ;;  %1531 = vst [vmem:[%s2115_s21 + $0xa98] sm:$0xff] %v1019_v52  ;;  %v1042_v33 = vmul.f32 %v2099_v1, %v528_v30  ;;  %v530_v35 = vld [vmem:[%s2092_s6 + $0xb60] sm:$0xff]  ;;  %v531_v36 = vld [vmem:[%s2092_s6 + $0xb68] sm:$0xff]  ;;  %v1043_v37 = vmul.f32 %v2099_v1, %v529_v34 }
  0xed   : > { %1532 = vst [vmem:[%s2115_s21 + $0xaa0] sm:$0xff] %v1020_v53  ;;  %1533 = vst [vmem:[%s2115_s21 + $0xaa8] sm:$0xff] %v1021_v54  ;;  %v1044_v38 = vmul.f32 %v2099_v1, %v530_v35  ;;  %v1045_v39 = vmul.f32 %v2099_v1, %v531_v36  ;;  %v532_v40 = vld [vmem:[%s2092_s6 + $0xb70] sm:$0xff]  ;;  %v533_v41 = vld [vmem:[%s2092_s6 + $0xb78] sm:$0xff] }
  0xee   : > { %1534 = vst [vmem:[%s2115_s21 + $0xab0] sm:$0xff] %v1022_v58  ;;  %1535 = vst [vmem:[%s2115_s21 + $0xab8] sm:$0xff] %v1023_v59  ;;  %v534_v42 = vld [vmem:[%s2092_s6 + $0xb80] sm:$0xff]  ;;  %v1046_v43 = vmul.f32 %v2099_v1, %v532_v40  ;;  %v1047_v44 = vmul.f32 %v2099_v1, %v533_v41  ;;  %v535_v46 = vld [vmem:[%s2092_s6 + $0xb88] sm:$0xff] }
  0xef   : > { %1536 = vst [vmem:[%s2115_s21 + $0xac0] sm:$0xff] %v1024_v60  ;;  %1537 = vst [vmem:[%s2115_s21 + $0xac8] sm:$0xff] %v1025_v0  ;;  %v1048_v45 = vmul.f32 %v2099_v1, %v534_v42  ;;  %v536_v47 = vld [vmem:[%s2092_s6 + $0xb90] sm:$0xff]  ;;  %v537_v48 = vld [vmem:[%s2092_s6 + $0xb98] sm:$0xff]  ;;  %v1049_v49 = vmul.f32 %v2099_v1, %v535_v46 }
  0xf0   : > { %1538 = vst [vmem:[%s2115_s21 + $0xad0] sm:$0xff] %v1026_v2  ;;  %1539 = vst [vmem:[%s2115_s21 + $0xad8] sm:$0xff] %v1027_v3  ;;  %v1050_v50 = vmul.f32 %v2099_v1, %v536_v47  ;;  %v1051_v51 = vmul.f32 %v2099_v1, %v537_v48  ;;  %v538_v52 = vld [vmem:[%s2092_s6 + $0xba0] sm:$0xff]  ;;  %v539_v53 = vld [vmem:[%s2092_s6 + $0xba8] sm:$0xff] }
  0xf1   : > { %1540 = vst [vmem:[%s2115_s21 + $0xae0] sm:$0xff] %v1028_v7  ;;  %1541 = vst [vmem:[%s2115_s21 + $0xae8] sm:$0xff] %v1029_v8  ;;  %v540_v54 = vld [vmem:[%s2092_s6 + $0xbb0] sm:$0xff]  ;;  %v1052_v55 = vmul.f32 %v2099_v1, %v538_v52  ;;  %v1053_v56 = vmul.f32 %v2099_v1, %v539_v53  ;;  %v541_v58 = vld [vmem:[%s2092_s6 + $0xbb8] sm:$0xff] }
  0xf2   : > { %1542 = vst [vmem:[%s2115_s21 + $0xaf0] sm:$0xff] %v1030_v9  ;;  %1543 = vst [vmem:[%s2115_s21 + $0xaf8] sm:$0xff] %v1031_v13  ;;  %v1054_v57 = vmul.f32 %v2099_v1, %v540_v54  ;;  %v542_v59 = vld [vmem:[%s2092_s6 + $0xbc0] sm:$0xff]  ;;  %v543_v60 = vld [vmem:[%s2092_s6 + $0xbc8] sm:$0xff]  ;;  %v1055_v61 = vmul.f32 %v2099_v1, %v541_v58 }
  0xf3   : > { %1544 = vst [vmem:[%s2115_s21 + $0xb00] sm:$0xff] %v1032_v14  ;;  %1545 = vst [vmem:[%s2115_s21 + $0xb08] sm:$0xff] %v1033_v15  ;;  %v1056_v62 = vmul.f32 %v2099_v1, %v542_v59  ;;  %v1057_v63 = vmul.f32 %v2099_v1, %v543_v60  ;;  %v544_v0 = vld [vmem:[%s2092_s6 + $0xbd0] sm:$0xff]  ;;  %v545_v2 = vld [vmem:[%s2092_s6 + $0xbd8] sm:$0xff] }
  0xf4   : > { %1546 = vst [vmem:[%s2115_s21 + $0xb10] sm:$0xff] %v1034_v19  ;;  %1547 = vst [vmem:[%s2115_s21 + $0xb18] sm:$0xff] %v1035_v20  ;;  %v546_v3 = vld [vmem:[%s2092_s6 + $0xbe0] sm:$0xff]  ;;  %v1058_v4 = vmul.f32 %v2099_v1, %v544_v0  ;;  %v1059_v5 = vmul.f32 %v2099_v1, %v545_v2  ;;  %v547_v7 = vld [vmem:[%s2092_s6 + $0xbe8] sm:$0xff] }
  0xf5   : > { %1548 = vst [vmem:[%s2115_s21 + $0xb20] sm:$0xff] %v1036_v21  ;;  %1549 = vst [vmem:[%s2115_s21 + $0xb28] sm:$0xff] %v1037_v25  ;;  %v1060_v6 = vmul.f32 %v2099_v1, %v546_v3  ;;  %v548_v8 = vld [vmem:[%s2092_s6 + $0xbf0] sm:$0xff]  ;;  %v549_v9 = vld [vmem:[%s2092_s6 + $0xbf8] sm:$0xff]  ;;  %v1061_v10 = vmul.f32 %v2099_v1, %v547_v7 }
  0xf6   : > { %1550 = vst [vmem:[%s2115_s21 + $0xb30] sm:$0xff] %v1038_v26  ;;  %1551 = vst [vmem:[%s2115_s21 + $0xb38] sm:$0xff] %v1039_v27  ;;  %v1062_v11 = vmul.f32 %v2099_v1, %v548_v8  ;;  %v1063_v12 = vmul.f32 %v2099_v1, %v549_v9  ;;  %v550_v13 = vld [vmem:[%s2092_s6 + $0xc00] sm:$0xff]  ;;  %v551_v14 = vld [vmem:[%s2092_s6 + $0xc08] sm:$0xff] }
  0xf7   : > { %1552 = vst [vmem:[%s2115_s21 + $0xb40] sm:$0xff] %v1040_v31  ;;  %1553 = vst [vmem:[%s2115_s21 + $0xb48] sm:$0xff] %v1041_v32  ;;  %v552_v15 = vld [vmem:[%s2092_s6 + $0xc10] sm:$0xff]  ;;  %v1064_v16 = vmul.f32 %v2099_v1, %v550_v13  ;;  %v1065_v17 = vmul.f32 %v2099_v1, %v551_v14  ;;  %v553_v19 = vld [vmem:[%s2092_s6 + $0xc18] sm:$0xff] }
  0xf8   : > { %1554 = vst [vmem:[%s2115_s21 + $0xb50] sm:$0xff] %v1042_v33  ;;  %1555 = vst [vmem:[%s2115_s21 + $0xb58] sm:$0xff] %v1043_v37  ;;  %v1066_v18 = vmul.f32 %v2099_v1, %v552_v15  ;;  %v554_v20 = vld [vmem:[%s2092_s6 + $0xc20] sm:$0xff]  ;;  %v555_v21 = vld [vmem:[%s2092_s6 + $0xc28] sm:$0xff]  ;;  %v1067_v22 = vmul.f32 %v2099_v1, %v553_v19 }
  0xf9   : > { %1556 = vst [vmem:[%s2115_s21 + $0xb60] sm:$0xff] %v1044_v38  ;;  %1557 = vst [vmem:[%s2115_s21 + $0xb68] sm:$0xff] %v1045_v39  ;;  %v1068_v23 = vmul.f32 %v2099_v1, %v554_v20  ;;  %v1069_v24 = vmul.f32 %v2099_v1, %v555_v21  ;;  %v556_v25 = vld [vmem:[%s2092_s6 + $0xc30] sm:$0xff]  ;;  %v557_v26 = vld [vmem:[%s2092_s6 + $0xc38] sm:$0xff] }
  0xfa   : > { %1558 = vst [vmem:[%s2115_s21 + $0xb70] sm:$0xff] %v1046_v43  ;;  %1559 = vst [vmem:[%s2115_s21 + $0xb78] sm:$0xff] %v1047_v44  ;;  %v558_v27 = vld [vmem:[%s2092_s6 + $0xc40] sm:$0xff]  ;;  %v1070_v28 = vmul.f32 %v2099_v1, %v556_v25  ;;  %v1071_v29 = vmul.f32 %v2099_v1, %v557_v26  ;;  %v559_v31 = vld [vmem:[%s2092_s6 + $0xc48] sm:$0xff] }
  0xfb   : > { %1560 = vst [vmem:[%s2115_s21 + $0xb80] sm:$0xff] %v1048_v45  ;;  %1561 = vst [vmem:[%s2115_s21 + $0xb88] sm:$0xff] %v1049_v49  ;;  %v1072_v30 = vmul.f32 %v2099_v1, %v558_v27  ;;  %v560_v32 = vld [vmem:[%s2092_s6 + $0xc50] sm:$0xff]  ;;  %v561_v33 = vld [vmem:[%s2092_s6 + $0xc58] sm:$0xff]  ;;  %v1073_v34 = vmul.f32 %v2099_v1, %v559_v31 }
  0xfc   : > { %1562 = vst [vmem:[%s2115_s21 + $0xb90] sm:$0xff] %v1050_v50  ;;  %1563 = vst [vmem:[%s2115_s21 + $0xb98] sm:$0xff] %v1051_v51  ;;  %v1074_v35 = vmul.f32 %v2099_v1, %v560_v32  ;;  %v1075_v36 = vmul.f32 %v2099_v1, %v561_v33  ;;  %v562_v37 = vld [vmem:[%s2092_s6 + $0xc60] sm:$0xff]  ;;  %v563_v38 = vld [vmem:[%s2092_s6 + $0xc68] sm:$0xff] }
  0xfd   : > { %1564 = vst [vmem:[%s2115_s21 + $0xba0] sm:$0xff] %v1052_v55  ;;  %1565 = vst [vmem:[%s2115_s21 + $0xba8] sm:$0xff] %v1053_v56  ;;  %v564_v39 = vld [vmem:[%s2092_s6 + $0xc70] sm:$0xff]  ;;  %v1076_v40 = vmul.f32 %v2099_v1, %v562_v37  ;;  %v1077_v41 = vmul.f32 %v2099_v1, %v563_v38  ;;  %v565_v43 = vld [vmem:[%s2092_s6 + $0xc78] sm:$0xff] }
  0xfe   : > { %1566 = vst [vmem:[%s2115_s21 + $0xbb0] sm:$0xff] %v1054_v57  ;;  %1567 = vst [vmem:[%s2115_s21 + $0xbb8] sm:$0xff] %v1055_v61  ;;  %v1078_v42 = vmul.f32 %v2099_v1, %v564_v39  ;;  %v566_v44 = vld [vmem:[%s2092_s6 + $0xc80] sm:$0xff]  ;;  %v567_v45 = vld [vmem:[%s2092_s6 + $0xc88] sm:$0xff]  ;;  %v1079_v46 = vmul.f32 %v2099_v1, %v565_v43 }
  0xff   : > { %1568 = vst [vmem:[%s2115_s21 + $0xbc0] sm:$0xff] %v1056_v62  ;;  %1569 = vst [vmem:[%s2115_s21 + $0xbc8] sm:$0xff] %v1057_v63  ;;  %v1080_v47 = vmul.f32 %v2099_v1, %v566_v44  ;;  %v1081_v48 = vmul.f32 %v2099_v1, %v567_v45  ;;  %v568_v49 = vld [vmem:[%s2092_s6 + $0xc90] sm:$0xff]  ;;  %v569_v50 = vld [vmem:[%s2092_s6 + $0xc98] sm:$0xff] }
 0x100   : > { %1570 = vst [vmem:[%s2115_s21 + $0xbd0] sm:$0xff] %v1058_v4  ;;  %1571 = vst [vmem:[%s2115_s21 + $0xbd8] sm:$0xff] %v1059_v5  ;;  %v570_v51 = vld [vmem:[%s2092_s6 + $0xca0] sm:$0xff]  ;;  %v1082_v52 = vmul.f32 %v2099_v1, %v568_v49  ;;  %v1083_v53 = vmul.f32 %v2099_v1, %v569_v50  ;;  %v571_v55 = vld [vmem:[%s2092_s6 + $0xca8] sm:$0xff] }
 0x101   : > { %1572 = vst [vmem:[%s2115_s21 + $0xbe0] sm:$0xff] %v1060_v6  ;;  %1573 = vst [vmem:[%s2115_s21 + $0xbe8] sm:$0xff] %v1061_v10  ;;  %v1084_v54 = vmul.f32 %v2099_v1, %v570_v51  ;;  %v572_v56 = vld [vmem:[%s2092_s6 + $0xcb0] sm:$0xff]  ;;  %v573_v57 = vld [vmem:[%s2092_s6 + $0xcb8] sm:$0xff]  ;;  %v1085_v58 = vmul.f32 %v2099_v1, %v571_v55 }
 0x102   : > { %1574 = vst [vmem:[%s2115_s21 + $0xbf0] sm:$0xff] %v1062_v11  ;;  %1575 = vst [vmem:[%s2115_s21 + $0xbf8] sm:$0xff] %v1063_v12  ;;  %v1086_v59 = vmul.f32 %v2099_v1, %v572_v56  ;;  %v1087_v60 = vmul.f32 %v2099_v1, %v573_v57  ;;  %v574_v61 = vld [vmem:[%s2092_s6 + $0xcc0] sm:$0xff]  ;;  %v575_v62 = vld [vmem:[%s2092_s6 + $0xcc8] sm:$0xff] }
 0x103   : > { %1576 = vst [vmem:[%s2115_s21 + $0xc00] sm:$0xff] %v1064_v16  ;;  %1577 = vst [vmem:[%s2115_s21 + $0xc08] sm:$0xff] %v1065_v17  ;;  %v576_v63 = vld [vmem:[%s2092_s6 + $0xcd0] sm:$0xff]  ;;  %v1088_v0 = vmul.f32 %v2099_v1, %v574_v61  ;;  %v1089_v2 = vmul.f32 %v2099_v1, %v575_v62  ;;  %v577_v4 = vld [vmem:[%s2092_s6 + $0xcd8] sm:$0xff] }
 0x104   : > { %1578 = vst [vmem:[%s2115_s21 + $0xc10] sm:$0xff] %v1066_v18  ;;  %1579 = vst [vmem:[%s2115_s21 + $0xc18] sm:$0xff] %v1067_v22  ;;  %v1090_v3 = vmul.f32 %v2099_v1, %v576_v63  ;;  %v578_v5 = vld [vmem:[%s2092_s6 + $0xce0] sm:$0xff]  ;;  %v579_v6 = vld [vmem:[%s2092_s6 + $0xce8] sm:$0xff]  ;;  %v1091_v7 = vmul.f32 %v2099_v1, %v577_v4 }
 0x105   : > { %1580 = vst [vmem:[%s2115_s21 + $0xc20] sm:$0xff] %v1068_v23  ;;  %1581 = vst [vmem:[%s2115_s21 + $0xc28] sm:$0xff] %v1069_v24  ;;  %v1092_v8 = vmul.f32 %v2099_v1, %v578_v5  ;;  %v1093_v9 = vmul.f32 %v2099_v1, %v579_v6  ;;  %v580_v10 = vld [vmem:[%s2092_s6 + $0xcf0] sm:$0xff]  ;;  %v581_v11 = vld [vmem:[%s2092_s6 + $0xcf8] sm:$0xff] }
 0x106   : > { %1582 = vst [vmem:[%s2115_s21 + $0xc30] sm:$0xff] %v1070_v28  ;;  %1583 = vst [vmem:[%s2115_s21 + $0xc38] sm:$0xff] %v1071_v29  ;;  %v582_v12 = vld [vmem:[%s2092_s6 + $0xd00] sm:$0xff]  ;;  %v1094_v13 = vmul.f32 %v2099_v1, %v580_v10  ;;  %v1095_v14 = vmul.f32 %v2099_v1, %v581_v11  ;;  %v583_v16 = vld [vmem:[%s2092_s6 + $0xd08] sm:$0xff] }
 0x107   : > { %1584 = vst [vmem:[%s2115_s21 + $0xc40] sm:$0xff] %v1072_v30  ;;  %1585 = vst [vmem:[%s2115_s21 + $0xc48] sm:$0xff] %v1073_v34  ;;  %v1096_v15 = vmul.f32 %v2099_v1, %v582_v12  ;;  %v584_v17 = vld [vmem:[%s2092_s6 + $0xd10] sm:$0xff]  ;;  %v585_v18 = vld [vmem:[%s2092_s6 + $0xd18] sm:$0xff]  ;;  %v1097_v19 = vmul.f32 %v2099_v1, %v583_v16 }
 0x108   : > { %1586 = vst [vmem:[%s2115_s21 + $0xc50] sm:$0xff] %v1074_v35  ;;  %1587 = vst [vmem:[%s2115_s21 + $0xc58] sm:$0xff] %v1075_v36  ;;  %v1098_v20 = vmul.f32 %v2099_v1, %v584_v17  ;;  %v1099_v21 = vmul.f32 %v2099_v1, %v585_v18  ;;  %v586_v22 = vld [vmem:[%s2092_s6 + $0xd20] sm:$0xff]  ;;  %v587_v23 = vld [vmem:[%s2092_s6 + $0xd28] sm:$0xff] }
 0x109   : > { %1588 = vst [vmem:[%s2115_s21 + $0xc60] sm:$0xff] %v1076_v40  ;;  %1589 = vst [vmem:[%s2115_s21 + $0xc68] sm:$0xff] %v1077_v41  ;;  %v588_v24 = vld [vmem:[%s2092_s6 + $0xd30] sm:$0xff]  ;;  %v1100_v25 = vmul.f32 %v2099_v1, %v586_v22  ;;  %v1101_v26 = vmul.f32 %v2099_v1, %v587_v23  ;;  %v589_v28 = vld [vmem:[%s2092_s6 + $0xd38] sm:$0xff] }
 0x10a   : > { %1590 = vst [vmem:[%s2115_s21 + $0xc70] sm:$0xff] %v1078_v42  ;;  %1591 = vst [vmem:[%s2115_s21 + $0xc78] sm:$0xff] %v1079_v46  ;;  %v1102_v27 = vmul.f32 %v2099_v1, %v588_v24  ;;  %v590_v29 = vld [vmem:[%s2092_s6 + $0xd40] sm:$0xff]  ;;  %v591_v30 = vld [vmem:[%s2092_s6 + $0xd48] sm:$0xff]  ;;  %v1103_v31 = vmul.f32 %v2099_v1, %v589_v28 }
 0x10b   : > { %1592 = vst [vmem:[%s2115_s21 + $0xc80] sm:$0xff] %v1080_v47  ;;  %1593 = vst [vmem:[%s2115_s21 + $0xc88] sm:$0xff] %v1081_v48  ;;  %v1104_v32 = vmul.f32 %v2099_v1, %v590_v29  ;;  %v1105_v33 = vmul.f32 %v2099_v1, %v591_v30  ;;  %v592_v34 = vld [vmem:[%s2092_s6 + $0xd50] sm:$0xff]  ;;  %v593_v35 = vld [vmem:[%s2092_s6 + $0xd58] sm:$0xff] }
 0x10c   : > { %1594 = vst [vmem:[%s2115_s21 + $0xc90] sm:$0xff] %v1082_v52  ;;  %1595 = vst [vmem:[%s2115_s21 + $0xc98] sm:$0xff] %v1083_v53  ;;  %v594_v36 = vld [vmem:[%s2092_s6 + $0xd60] sm:$0xff]  ;;  %v1106_v37 = vmul.f32 %v2099_v1, %v592_v34  ;;  %v1107_v38 = vmul.f32 %v2099_v1, %v593_v35  ;;  %v595_v40 = vld [vmem:[%s2092_s6 + $0xd68] sm:$0xff] }
 0x10d   : > { %1596 = vst [vmem:[%s2115_s21 + $0xca0] sm:$0xff] %v1084_v54  ;;  %1597 = vst [vmem:[%s2115_s21 + $0xca8] sm:$0xff] %v1085_v58  ;;  %v1108_v39 = vmul.f32 %v2099_v1, %v594_v36  ;;  %v596_v41 = vld [vmem:[%s2092_s6 + $0xd70] sm:$0xff]  ;;  %v597_v42 = vld [vmem:[%s2092_s6 + $0xd78] sm:$0xff]  ;;  %v1109_v43 = vmul.f32 %v2099_v1, %v595_v40 }
 0x10e   : > { %1598 = vst [vmem:[%s2115_s21 + $0xcb0] sm:$0xff] %v1086_v59  ;;  %1599 = vst [vmem:[%s2115_s21 + $0xcb8] sm:$0xff] %v1087_v60  ;;  %v1110_v44 = vmul.f32 %v2099_v1, %v596_v41  ;;  %v1111_v45 = vmul.f32 %v2099_v1, %v597_v42  ;;  %v598_v46 = vld [vmem:[%s2092_s6 + $0xd80] sm:$0xff]  ;;  %v599_v47 = vld [vmem:[%s2092_s6 + $0xd88] sm:$0xff] }
 0x10f   : > { %1600 = vst [vmem:[%s2115_s21 + $0xcc0] sm:$0xff] %v1088_v0  ;;  %1601 = vst [vmem:[%s2115_s21 + $0xcc8] sm:$0xff] %v1089_v2  ;;  %v600_v48 = vld [vmem:[%s2092_s6 + $0xd90] sm:$0xff]  ;;  %v1112_v49 = vmul.f32 %v2099_v1, %v598_v46  ;;  %v1113_v50 = vmul.f32 %v2099_v1, %v599_v47  ;;  %v601_v52 = vld [vmem:[%s2092_s6 + $0xd98] sm:$0xff] }
 0x110   : > { %1602 = vst [vmem:[%s2115_s21 + $0xcd0] sm:$0xff] %v1090_v3  ;;  %1603 = vst [vmem:[%s2115_s21 + $0xcd8] sm:$0xff] %v1091_v7  ;;  %v1114_v51 = vmul.f32 %v2099_v1, %v600_v48  ;;  %v602_v53 = vld [vmem:[%s2092_s6 + $0xda0] sm:$0xff]  ;;  %v603_v54 = vld [vmem:[%s2092_s6 + $0xda8] sm:$0xff]  ;;  %v1115_v55 = vmul.f32 %v2099_v1, %v601_v52 }
 0x111   : > { %1604 = vst [vmem:[%s2115_s21 + $0xce0] sm:$0xff] %v1092_v8  ;;  %1605 = vst [vmem:[%s2115_s21 + $0xce8] sm:$0xff] %v1093_v9  ;;  %v1116_v56 = vmul.f32 %v2099_v1, %v602_v53  ;;  %v1117_v57 = vmul.f32 %v2099_v1, %v603_v54  ;;  %v604_v58 = vld [vmem:[%s2092_s6 + $0xdb0] sm:$0xff]  ;;  %v605_v59 = vld [vmem:[%s2092_s6 + $0xdb8] sm:$0xff] }
 0x112   : > { %1606 = vst [vmem:[%s2115_s21 + $0xcf0] sm:$0xff] %v1094_v13  ;;  %1607 = vst [vmem:[%s2115_s21 + $0xcf8] sm:$0xff] %v1095_v14  ;;  %v606_v60 = vld [vmem:[%s2092_s6 + $0xdc0] sm:$0xff]  ;;  %v1118_v61 = vmul.f32 %v2099_v1, %v604_v58  ;;  %v1119_v62 = vmul.f32 %v2099_v1, %v605_v59  ;;  %v607_v0 = vld [vmem:[%s2092_s6 + $0xdc8] sm:$0xff] }
 0x113   : > { %1608 = vst [vmem:[%s2115_s21 + $0xd00] sm:$0xff] %v1096_v15  ;;  %1609 = vst [vmem:[%s2115_s21 + $0xd08] sm:$0xff] %v1097_v19  ;;  %v1120_v63 = vmul.f32 %v2099_v1, %v606_v60  ;;  %v608_v2 = vld [vmem:[%s2092_s6 + $0xdd0] sm:$0xff]  ;;  %v609_v3 = vld [vmem:[%s2092_s6 + $0xdd8] sm:$0xff]  ;;  %v1121_v4 = vmul.f32 %v2099_v1, %v607_v0 }
 0x114   : > { %1610 = vst [vmem:[%s2115_s21 + $0xd10] sm:$0xff] %v1098_v20  ;;  %1611 = vst [vmem:[%s2115_s21 + $0xd18] sm:$0xff] %v1099_v21  ;;  %v1122_v5 = vmul.f32 %v2099_v1, %v608_v2  ;;  %v1123_v6 = vmul.f32 %v2099_v1, %v609_v3  ;;  %v610_v7 = vld [vmem:[%s2092_s6 + $0xde0] sm:$0xff]  ;;  %v611_v8 = vld [vmem:[%s2092_s6 + $0xde8] sm:$0xff] }
 0x115   : > { %1612 = vst [vmem:[%s2115_s21 + $0xd20] sm:$0xff] %v1100_v25  ;;  %1613 = vst [vmem:[%s2115_s21 + $0xd28] sm:$0xff] %v1101_v26  ;;  %v612_v9 = vld [vmem:[%s2092_s6 + $0xdf0] sm:$0xff]  ;;  %v1124_v10 = vmul.f32 %v2099_v1, %v610_v7  ;;  %v1125_v11 = vmul.f32 %v2099_v1, %v611_v8  ;;  %v613_v13 = vld [vmem:[%s2092_s6 + $0xdf8] sm:$0xff] }
 0x116   : > { %1614 = vst [vmem:[%s2115_s21 + $0xd30] sm:$0xff] %v1102_v27  ;;  %1615 = vst [vmem:[%s2115_s21 + $0xd38] sm:$0xff] %v1103_v31  ;;  %v1126_v12 = vmul.f32 %v2099_v1, %v612_v9  ;;  %v614_v14 = vld [vmem:[%s2092_s6 + $0xe00] sm:$0xff]  ;;  %v615_v15 = vld [vmem:[%s2092_s6 + $0xe08] sm:$0xff]  ;;  %v1127_v16 = vmul.f32 %v2099_v1, %v613_v13 }
 0x117   : > { %1616 = vst [vmem:[%s2115_s21 + $0xd40] sm:$0xff] %v1104_v32  ;;  %1617 = vst [vmem:[%s2115_s21 + $0xd48] sm:$0xff] %v1105_v33  ;;  %v1128_v17 = vmul.f32 %v2099_v1, %v614_v14  ;;  %v1129_v18 = vmul.f32 %v2099_v1, %v615_v15  ;;  %v616_v19 = vld [vmem:[%s2092_s6 + $0xe10] sm:$0xff]  ;;  %v617_v20 = vld [vmem:[%s2092_s6 + $0xe18] sm:$0xff] }
 0x118   : > { %1618 = vst [vmem:[%s2115_s21 + $0xd50] sm:$0xff] %v1106_v37  ;;  %1619 = vst [vmem:[%s2115_s21 + $0xd58] sm:$0xff] %v1107_v38  ;;  %v618_v21 = vld [vmem:[%s2092_s6 + $0xe20] sm:$0xff]  ;;  %v1130_v22 = vmul.f32 %v2099_v1, %v616_v19  ;;  %v1131_v23 = vmul.f32 %v2099_v1, %v617_v20  ;;  %v619_v25 = vld [vmem:[%s2092_s6 + $0xe28] sm:$0xff] }
 0x119   : > { %1620 = vst [vmem:[%s2115_s21 + $0xd60] sm:$0xff] %v1108_v39  ;;  %1621 = vst [vmem:[%s2115_s21 + $0xd68] sm:$0xff] %v1109_v43  ;;  %v1132_v24 = vmul.f32 %v2099_v1, %v618_v21  ;;  %v620_v26 = vld [vmem:[%s2092_s6 + $0xe30] sm:$0xff]  ;;  %v621_v27 = vld [vmem:[%s2092_s6 + $0xe38] sm:$0xff]  ;;  %v1133_v28 = vmul.f32 %v2099_v1, %v619_v25 }
 0x11a   : > { %1622 = vst [vmem:[%s2115_s21 + $0xd70] sm:$0xff] %v1110_v44  ;;  %1623 = vst [vmem:[%s2115_s21 + $0xd78] sm:$0xff] %v1111_v45  ;;  %v1134_v29 = vmul.f32 %v2099_v1, %v620_v26  ;;  %v1135_v30 = vmul.f32 %v2099_v1, %v621_v27  ;;  %v622_v31 = vld [vmem:[%s2092_s6 + $0xe40] sm:$0xff]  ;;  %v623_v32 = vld [vmem:[%s2092_s6 + $0xe48] sm:$0xff] }
 0x11b   : > { %1624 = vst [vmem:[%s2115_s21 + $0xd80] sm:$0xff] %v1112_v49  ;;  %1625 = vst [vmem:[%s2115_s21 + $0xd88] sm:$0xff] %v1113_v50  ;;  %v624_v33 = vld [vmem:[%s2092_s6 + $0xe50] sm:$0xff]  ;;  %v1136_v34 = vmul.f32 %v2099_v1, %v622_v31  ;;  %v1137_v35 = vmul.f32 %v2099_v1, %v623_v32  ;;  %v625_v37 = vld [vmem:[%s2092_s6 + $0xe58] sm:$0xff] }
 0x11c   : > { %1626 = vst [vmem:[%s2115_s21 + $0xd90] sm:$0xff] %v1114_v51  ;;  %1627 = vst [vmem:[%s2115_s21 + $0xd98] sm:$0xff] %v1115_v55  ;;  %v1138_v36 = vmul.f32 %v2099_v1, %v624_v33  ;;  %v626_v38 = vld [vmem:[%s2092_s6 + $0xe60] sm:$0xff]  ;;  %v627_v39 = vld [vmem:[%s2092_s6 + $0xe68] sm:$0xff]  ;;  %v1139_v40 = vmul.f32 %v2099_v1, %v625_v37 }
 0x11d   : > { %1628 = vst [vmem:[%s2115_s21 + $0xda0] sm:$0xff] %v1116_v56  ;;  %1629 = vst [vmem:[%s2115_s21 + $0xda8] sm:$0xff] %v1117_v57  ;;  %v1140_v41 = vmul.f32 %v2099_v1, %v626_v38  ;;  %v1141_v42 = vmul.f32 %v2099_v1, %v627_v39  ;;  %v628_v43 = vld [vmem:[%s2092_s6 + $0xe70] sm:$0xff]  ;;  %v629_v44 = vld [vmem:[%s2092_s6 + $0xe78] sm:$0xff] }
 0x11e   : > { %1630 = vst [vmem:[%s2115_s21 + $0xdb0] sm:$0xff] %v1118_v61  ;;  %1631 = vst [vmem:[%s2115_s21 + $0xdb8] sm:$0xff] %v1119_v62  ;;  %v630_v45 = vld [vmem:[%s2092_s6 + $0xe80] sm:$0xff]  ;;  %v1142_v46 = vmul.f32 %v2099_v1, %v628_v43  ;;  %v1143_v47 = vmul.f32 %v2099_v1, %v629_v44  ;;  %v631_v49 = vld [vmem:[%s2092_s6 + $0xe88] sm:$0xff] }
 0x11f   : > { %1632 = vst [vmem:[%s2115_s21 + $0xdc0] sm:$0xff] %v1120_v63  ;;  %1633 = vst [vmem:[%s2115_s21 + $0xdc8] sm:$0xff] %v1121_v4  ;;  %v1144_v48 = vmul.f32 %v2099_v1, %v630_v45  ;;  %v632_v50 = vld [vmem:[%s2092_s6 + $0xe90] sm:$0xff]  ;;  %v633_v51 = vld [vmem:[%s2092_s6 + $0xe98] sm:$0xff]  ;;  %v1145_v52 = vmul.f32 %v2099_v1, %v631_v49 }
 0x120   : > { %1634 = vst [vmem:[%s2115_s21 + $0xdd0] sm:$0xff] %v1122_v5  ;;  %1635 = vst [vmem:[%s2115_s21 + $0xdd8] sm:$0xff] %v1123_v6  ;;  %v1146_v53 = vmul.f32 %v2099_v1, %v632_v50  ;;  %v1147_v54 = vmul.f32 %v2099_v1, %v633_v51  ;;  %v634_v55 = vld [vmem:[%s2092_s6 + $0xea0] sm:$0xff]  ;;  %v635_v56 = vld [vmem:[%s2092_s6 + $0xea8] sm:$0xff] }
 0x121   : > { %1636 = vst [vmem:[%s2115_s21 + $0xde0] sm:$0xff] %v1124_v10  ;;  %1637 = vst [vmem:[%s2115_s21 + $0xde8] sm:$0xff] %v1125_v11  ;;  %v636_v57 = vld [vmem:[%s2092_s6 + $0xeb0] sm:$0xff]  ;;  %v1148_v58 = vmul.f32 %v2099_v1, %v634_v55  ;;  %v1149_v59 = vmul.f32 %v2099_v1, %v635_v56  ;;  %v637_v61 = vld [vmem:[%s2092_s6 + $0xeb8] sm:$0xff] }
 0x122   : > { %1638 = vst [vmem:[%s2115_s21 + $0xdf0] sm:$0xff] %v1126_v12  ;;  %1639 = vst [vmem:[%s2115_s21 + $0xdf8] sm:$0xff] %v1127_v16  ;;  %v1150_v60 = vmul.f32 %v2099_v1, %v636_v57  ;;  %v638_v62 = vld [vmem:[%s2092_s6 + $0xec0] sm:$0xff]  ;;  %v639_v63 = vld [vmem:[%s2092_s6 + $0xec8] sm:$0xff]  ;;  %v1151_v0 = vmul.f32 %v2099_v1, %v637_v61 }
 0x123   : > { %1640 = vst [vmem:[%s2115_s21 + $0xe00] sm:$0xff] %v1128_v17  ;;  %1641 = vst [vmem:[%s2115_s21 + $0xe08] sm:$0xff] %v1129_v18  ;;  %v1152_v2 = vmul.f32 %v2099_v1, %v638_v62  ;;  %v1153_v3 = vmul.f32 %v2099_v1, %v639_v63  ;;  %v640_v4 = vld [vmem:[%s2092_s6 + $0xed0] sm:$0xff]  ;;  %v641_v5 = vld [vmem:[%s2092_s6 + $0xed8] sm:$0xff] }
 0x124   : > { %1642 = vst [vmem:[%s2115_s21 + $0xe10] sm:$0xff] %v1130_v22  ;;  %1643 = vst [vmem:[%s2115_s21 + $0xe18] sm:$0xff] %v1131_v23  ;;  %v642_v6 = vld [vmem:[%s2092_s6 + $0xee0] sm:$0xff]  ;;  %v1154_v7 = vmul.f32 %v2099_v1, %v640_v4  ;;  %v1155_v8 = vmul.f32 %v2099_v1, %v641_v5  ;;  %v643_v10 = vld [vmem:[%s2092_s6 + $0xee8] sm:$0xff] }
 0x125   : > { %1644 = vst [vmem:[%s2115_s21 + $0xe20] sm:$0xff] %v1132_v24  ;;  %1645 = vst [vmem:[%s2115_s21 + $0xe28] sm:$0xff] %v1133_v28  ;;  %v1156_v9 = vmul.f32 %v2099_v1, %v642_v6  ;;  %v644_v11 = vld [vmem:[%s2092_s6 + $0xef0] sm:$0xff]  ;;  %v645_v12 = vld [vmem:[%s2092_s6 + $0xef8] sm:$0xff]  ;;  %v1157_v13 = vmul.f32 %v2099_v1, %v643_v10 }
 0x126   : > { %1646 = vst [vmem:[%s2115_s21 + $0xe30] sm:$0xff] %v1134_v29  ;;  %1647 = vst [vmem:[%s2115_s21 + $0xe38] sm:$0xff] %v1135_v30  ;;  %v1158_v14 = vmul.f32 %v2099_v1, %v644_v11  ;;  %v1159_v15 = vmul.f32 %v2099_v1, %v645_v12  ;;  %v646_v16 = vld [vmem:[%s2092_s6 + $0xf00] sm:$0xff]  ;;  %v647_v17 = vld [vmem:[%s2092_s6 + $0xf08] sm:$0xff] }
 0x127   : > { %1648 = vst [vmem:[%s2115_s21 + $0xe40] sm:$0xff] %v1136_v34  ;;  %1649 = vst [vmem:[%s2115_s21 + $0xe48] sm:$0xff] %v1137_v35  ;;  %v648_v18 = vld [vmem:[%s2092_s6 + $0xf10] sm:$0xff]  ;;  %v1160_v19 = vmul.f32 %v2099_v1, %v646_v16  ;;  %v1161_v20 = vmul.f32 %v2099_v1, %v647_v17  ;;  %v649_v22 = vld [vmem:[%s2092_s6 + $0xf18] sm:$0xff] }
 0x128   : > { %1650 = vst [vmem:[%s2115_s21 + $0xe50] sm:$0xff] %v1138_v36  ;;  %1651 = vst [vmem:[%s2115_s21 + $0xe58] sm:$0xff] %v1139_v40  ;;  %v1162_v21 = vmul.f32 %v2099_v1, %v648_v18  ;;  %v650_v23 = vld [vmem:[%s2092_s6 + $0xf20] sm:$0xff]  ;;  %v651_v24 = vld [vmem:[%s2092_s6 + $0xf28] sm:$0xff]  ;;  %v1163_v25 = vmul.f32 %v2099_v1, %v649_v22 }
 0x129   : > { %1652 = vst [vmem:[%s2115_s21 + $0xe60] sm:$0xff] %v1140_v41  ;;  %1653 = vst [vmem:[%s2115_s21 + $0xe68] sm:$0xff] %v1141_v42  ;;  %v1164_v26 = vmul.f32 %v2099_v1, %v650_v23  ;;  %v1165_v27 = vmul.f32 %v2099_v1, %v651_v24  ;;  %v652_v28 = vld [vmem:[%s2092_s6 + $0xf30] sm:$0xff]  ;;  %v653_v29 = vld [vmem:[%s2092_s6 + $0xf38] sm:$0xff] }
 0x12a   : > { %1654 = vst [vmem:[%s2115_s21 + $0xe70] sm:$0xff] %v1142_v46  ;;  %1655 = vst [vmem:[%s2115_s21 + $0xe78] sm:$0xff] %v1143_v47  ;;  %v654_v30 = vld [vmem:[%s2092_s6 + $0xf40] sm:$0xff]  ;;  %v1166_v31 = vmul.f32 %v2099_v1, %v652_v28  ;;  %v1167_v32 = vmul.f32 %v2099_v1, %v653_v29  ;;  %v655_v34 = vld [vmem:[%s2092_s6 + $0xf48] sm:$0xff] }
 0x12b   : > { %1656 = vst [vmem:[%s2115_s21 + $0xe80] sm:$0xff] %v1144_v48  ;;  %1657 = vst [vmem:[%s2115_s21 + $0xe88] sm:$0xff] %v1145_v52  ;;  %v1168_v33 = vmul.f32 %v2099_v1, %v654_v30  ;;  %v656_v35 = vld [vmem:[%s2092_s6 + $0xf50] sm:$0xff]  ;;  %v657_v36 = vld [vmem:[%s2092_s6 + $0xf58] sm:$0xff]  ;;  %v1169_v37 = vmul.f32 %v2099_v1, %v655_v34 }
 0x12c   : > { %1658 = vst [vmem:[%s2115_s21 + $0xe90] sm:$0xff] %v1146_v53  ;;  %1659 = vst [vmem:[%s2115_s21 + $0xe98] sm:$0xff] %v1147_v54  ;;  %v1170_v38 = vmul.f32 %v2099_v1, %v656_v35  ;;  %v1171_v39 = vmul.f32 %v2099_v1, %v657_v36  ;;  %v658_v40 = vld [vmem:[%s2092_s6 + $0xf60] sm:$0xff]  ;;  %v659_v41 = vld [vmem:[%s2092_s6 + $0xf68] sm:$0xff] }
 0x12d   : > { %1660 = vst [vmem:[%s2115_s21 + $0xea0] sm:$0xff] %v1148_v58  ;;  %1661 = vst [vmem:[%s2115_s21 + $0xea8] sm:$0xff] %v1149_v59  ;;  %v660_v42 = vld [vmem:[%s2092_s6 + $0xf70] sm:$0xff]  ;;  %v1172_v43 = vmul.f32 %v2099_v1, %v658_v40  ;;  %v1173_v44 = vmul.f32 %v2099_v1, %v659_v41  ;;  %v661_v46 = vld [vmem:[%s2092_s6 + $0xf78] sm:$0xff] }
 0x12e   : > { %1662 = vst [vmem:[%s2115_s21 + $0xeb0] sm:$0xff] %v1150_v60  ;;  %1663 = vst [vmem:[%s2115_s21 + $0xeb8] sm:$0xff] %v1151_v0  ;;  %v1174_v45 = vmul.f32 %v2099_v1, %v660_v42  ;;  %v662_v47 = vld [vmem:[%s2092_s6 + $0xf80] sm:$0xff]  ;;  %v663_v48 = vld [vmem:[%s2092_s6 + $0xf88] sm:$0xff]  ;;  %v1175_v49 = vmul.f32 %v2099_v1, %v661_v46 }
 0x12f   : > { %1664 = vst [vmem:[%s2115_s21 + $0xec0] sm:$0xff] %v1152_v2  ;;  %1665 = vst [vmem:[%s2115_s21 + $0xec8] sm:$0xff] %v1153_v3  ;;  %v1176_v50 = vmul.f32 %v2099_v1, %v662_v47  ;;  %v1177_v51 = vmul.f32 %v2099_v1, %v663_v48  ;;  %v664_v52 = vld [vmem:[%s2092_s6 + $0xf90] sm:$0xff]  ;;  %v665_v53 = vld [vmem:[%s2092_s6 + $0xf98] sm:$0xff] }
 0x130   : > { %1666 = vst [vmem:[%s2115_s21 + $0xed0] sm:$0xff] %v1154_v7  ;;  %1667 = vst [vmem:[%s2115_s21 + $0xed8] sm:$0xff] %v1155_v8  ;;  %v666_v54 = vld [vmem:[%s2092_s6 + $0xfa0] sm:$0xff]  ;;  %v1178_v55 = vmul.f32 %v2099_v1, %v664_v52  ;;  %v1179_v56 = vmul.f32 %v2099_v1, %v665_v53  ;;  %v667_v58 = vld [vmem:[%s2092_s6 + $0xfa8] sm:$0xff] }
 0x131   : > { %1668 = vst [vmem:[%s2115_s21 + $0xee0] sm:$0xff] %v1156_v9  ;;  %1669 = vst [vmem:[%s2115_s21 + $0xee8] sm:$0xff] %v1157_v13  ;;  %v1180_v57 = vmul.f32 %v2099_v1, %v666_v54  ;;  %v668_v59 = vld [vmem:[%s2092_s6 + $0xfb0] sm:$0xff]  ;;  %v669_v60 = vld [vmem:[%s2092_s6 + $0xfb8] sm:$0xff]  ;;  %v1181_v61 = vmul.f32 %v2099_v1, %v667_v58 }
 0x132   : > { %1670 = vst [vmem:[%s2115_s21 + $0xef0] sm:$0xff] %v1158_v14  ;;  %1671 = vst [vmem:[%s2115_s21 + $0xef8] sm:$0xff] %v1159_v15  ;;  %v1182_v62 = vmul.f32 %v2099_v1, %v668_v59  ;;  %v1183_v63 = vmul.f32 %v2099_v1, %v669_v60  ;;  %v670_v0 = vld [vmem:[%s2092_s6 + $0xfc0] sm:$0xff]  ;;  %v671_v2 = vld [vmem:[%s2092_s6 + $0xfc8] sm:$0xff] }
 0x133   : > { %1672 = vst [vmem:[%s2115_s21 + $0xf00] sm:$0xff] %v1160_v19  ;;  %1673 = vst [vmem:[%s2115_s21 + $0xf08] sm:$0xff] %v1161_v20  ;;  %v672_v3 = vld [vmem:[%s2092_s6 + $0xfd0] sm:$0xff]  ;;  %v1184_v4 = vmul.f32 %v2099_v1, %v670_v0  ;;  %v1185_v5 = vmul.f32 %v2099_v1, %v671_v2  ;;  %v673_v7 = vld [vmem:[%s2092_s6 + $0xfd8] sm:$0xff] }
 0x134   : > { %1674 = vst [vmem:[%s2115_s21 + $0xf10] sm:$0xff] %v1162_v21  ;;  %1675 = vst [vmem:[%s2115_s21 + $0xf18] sm:$0xff] %v1163_v25  ;;  %v1186_v6 = vmul.f32 %v2099_v1, %v672_v3  ;;  %v674_v8 = vld [vmem:[%s2092_s6 + $0xfe0] sm:$0xff]  ;;  %v675_v9 = vld [vmem:[%s2092_s6 + $0xfe8] sm:$0xff]  ;;  %v1187_v10 = vmul.f32 %v2099_v1, %v673_v7 }
 0x135   : > { %1676 = vst [vmem:[%s2115_s21 + $0xf20] sm:$0xff] %v1164_v26  ;;  %1677 = vst [vmem:[%s2115_s21 + $0xf28] sm:$0xff] %v1165_v27  ;;  %v1188_v11 = vmul.f32 %v2099_v1, %v674_v8  ;;  %v1189_v12 = vmul.f32 %v2099_v1, %v675_v9  ;;  %v676_v13 = vld [vmem:[%s2092_s6 + $0xff0] sm:$0xff]  ;;  %v677_v14 = vld [vmem:[%s2092_s6 + $0xff8] sm:$0xff] }
 0x136   : > { %1678 = vst [vmem:[%s2115_s21 + $0xf30] sm:$0xff] %v1166_v31  ;;  %1679 = vst [vmem:[%s2115_s21 + $0xf38] sm:$0xff] %v1167_v32  ;;  %v1190_v15 = vmul.f32 %v2099_v1, %v676_v13  ;;  %v1191_v16 = vmul.f32 %v2099_v1, %v677_v14 }
 0x137   : > { %1680 = vst [vmem:[%s2115_s21 + $0xf40] sm:$0xff] %v1168_v33  ;;  %1681 = vst [vmem:[%s2115_s21 + $0xf48] sm:$0xff] %v1169_v37 }
 0x138   : > { %1682 = vst [vmem:[%s2115_s21 + $0xf50] sm:$0xff] %v1170_v38  ;;  %1683 = vst [vmem:[%s2115_s21 + $0xf58] sm:$0xff] %v1171_v39 }
 0x139   : > { %1684 = vst [vmem:[%s2115_s21 + $0xf60] sm:$0xff] %v1172_v43  ;;  %1685 = vst [vmem:[%s2115_s21 + $0xf68] sm:$0xff] %v1173_v44 }
 0x13a   : > { %1686 = vst [vmem:[%s2115_s21 + $0xf70] sm:$0xff] %v1174_v45  ;;  %1687 = vst [vmem:[%s2115_s21 + $0xf78] sm:$0xff] %v1175_v49 }
 0x13b   : > { %1688 = vst [vmem:[%s2115_s21 + $0xf80] sm:$0xff] %v1176_v50  ;;  %1689 = vst [vmem:[%s2115_s21 + $0xf88] sm:$0xff] %v1177_v51 }
 0x13c   : > { %1690 = vst [vmem:[%s2115_s21 + $0xf90] sm:$0xff] %v1178_v55  ;;  %1691 = vst [vmem:[%s2115_s21 + $0xf98] sm:$0xff] %v1179_v56 }
 0x13d   : > { %1692 = vst [vmem:[%s2115_s21 + $0xfa0] sm:$0xff] %v1180_v57  ;;  %1693 = vst [vmem:[%s2115_s21 + $0xfa8] sm:$0xff] %v1181_v61 }
 0x13e   : > { %1694 = vst [vmem:[%s2115_s21 + $0xfb0] sm:$0xff] %v1182_v62  ;;  %1695 = vst [vmem:[%s2115_s21 + $0xfb8] sm:$0xff] %v1183_v63 }
 0x13f   : > { %1696 = vst [vmem:[%s2115_s21 + $0xfc0] sm:$0xff] %v1184_v4  ;;  %1697 = vst [vmem:[%s2115_s21 + $0xfc8] sm:$0xff] %v1185_v5 }
 0x140   : > { %1698 = vst [vmem:[%s2115_s21 + $0xfd0] sm:$0xff] %v1186_v6  ;;  %1699 = vst [vmem:[%s2115_s21 + $0xfd8] sm:$0xff] %v1187_v10 }
 0x141   : > { %1700 = vst [vmem:[%s2115_s21 + $0xfe0] sm:$0xff] %v1188_v11  ;;  %1701 = vst [vmem:[%s2115_s21 + $0xfe8] sm:$0xff] %v1189_v12 }
 0x142   : > { %1702 = vst [vmem:[%s2115_s21 + $0xff0] sm:$0xff] %v1190_v15  ;;  %1703 = vst [vmem:[%s2115_s21 + $0xff8] sm:$0xff] %v1191_v16 }
 0x143   : > { %1905 = shalt.err (!%p1902_p2)
}
 0x144   : > { %s1906_s18 = scalar_lea.hbm %s3633_s7, 65536  ;;  %s1910_s25 = scalar_lea.hbm %s3691_s2, 131072 }
 0x145   : > { %p1907_p4 = scmp.ne.s32.totalorder %s3633_s7, %s1906_s18  ;;  %p1911_p9 = scmp.lt.u32.totalorder %s3633_s7, %s3691_s2 }
 0x146   : > { %p1912_p1 = scmp.lt.u32.totalorder %s1910_s25, %s1906_s18  ;;  %p1914_p6 = scmp.lt.u32.totalorder %s1906_s18, %s3633_s7 }
 0x147   : > { %p1908_p5 = pnand %p1907_p4, %p3698_p11 }
 0x148   : > { %p1913_p3 = por %p1912_p1, %p1911_p9 }
 0x149   : > { %p1909_p7 = pneg %p1908_p5 }
 0x14a   : > { %p1915_p12 = por %p1914_p6, %p1913_p3 }
 0x14c   : > { %p1916_p13 = pnand %p1915_p12, %p1909_p7 }
 0x14e   : > { %1919 = shalt.err (!%p1916_p13)
}
 0x14f   : > { %s1964_s30 = smov 1024   ;;  %s1965_s6 = smov 64  }
 0x150   : > { %1814 = dma.vmem_to_hbm [thread:$0]  (%p3698_p11), %s3635_s4, 65536, %s3633_s7, %s1705_s8, %s1964_s30, %s1964_s30, %s1965_s6  }
 0x151 PF: > { %s1734_s29 = sand.u32 1, %s1946_s11   ;;  %p3699_p8 = scmp.ne.s32.totalorder %s3696_s23, 0 }
 0x152   : > { %p3700_p10 = scmp.ge.s32.totalorder %s1958_s14, 2  ;;  %s1735_s21 = scalar_lea.sflag [#allocation5], %s1734_s29 }
 0x154   : > { %p1821_p0 = pnand %p3700_p10, %p3699_p8 }
 0x156   : > { %1941 = dma.done.wait (!%p1821_p0), %s1735_s21, 65536  }
 0x157   : > { %1943 = vsyncadd (!%p1821_p0), %s1735_s21, 4294901760  ;;  %p16_p2 = scmp.ge.s32.totalorder %s2009_s16, 4   ;;  %s3701_s11 = smov %s1950_s12 }
 0x158   : > { %s3702_s12 = smov %s1954_s13  ;;  %s3703_s13 = smov %s2021_s19 }
 0x159   : > { %s3704_s14 = smov %s2009_s16  ;;  %18 = sbr.rel (!%p16_p2) target bundleno = 7 (0x7), region = 73 }
 0x160   :  { %1740 = vsyncpa [#allocation4], 1 }
 0x161   :  { %1742 = vsyncpa [#allocation4 + $0x1], 1 }
 0x162   :  { %1743 = vsyncpa [#allocation5], 1 }
 0x163   :  { %1745 = vsyncpa [#allocation5 + $0x1], 1 }

</bundles_post_ra>
